<compile_context>
chip_gen: v7x
topology: tpu7x:2x2x1
jax: 0.10.0
libtpu: 0.0.40
codegen_flags: <defaults>
</compile_context>

<pallas_src>
import math
import functools

import jax
import jax.numpy as jnp
from jax.experimental import pallas as pl
from jax.experimental.pallas import tpu as pltpu


# Row indices of the packed (N_VECS, E) bias / layernorm parameter array.
_BQ, _BO, _BQ2, _BO2, _LN1G, _LN1B, _LN2G, _LN2B, _LN3G, _LN3B, _B2 = range(11)
_N_VECS = 11


# ----------------------------- kernel helpers ------------------------------

def _layer_norm(x, gamma, beta, eps=1e-5):
    # x: (T, E) f32; gamma/beta: (1, E) f32
    mean = jnp.mean(x, axis=-1, keepdims=True)
    var = jnp.mean((x - mean) ** 2, axis=-1, keepdims=True)
    return (x - mean) * jax.lax.rsqrt(var + eps) * gamma + beta


def _attend(x_f32, Wq_ref, bq, kT, v, Wo_ref, bo, h):
    """Fused-head attention for one query tile.

    x_f32:  (TQ, E) f32 query-side activations.
    Wq_ref: (E, E) bf16 ref, pre-transposed to (in, out), pre-scaled by 1/sqrt(d).
    bq:     (1, E) f32 (pre-scaled by 1/sqrt(d)).
    kT:     (h, d, Sk) bf16 key cache, head-major, already (contract, out).
    v:      (h, Sk, d) bf16 value cache, head-major.
    Wo_ref: (h, d, E) bf16 ref, head-major output projection.
    bo:     (1, E) f32.
    Returns (TQ, E) f32.
    """
    TQ, E = x_f32.shape
    d = E // h

    # Q projection: bf16 MXU inputs, f32 accumulation (scale folded on host).
    q = jnp.dot(x_f32.astype(jnp.bfloat16), Wq_ref[...],
                preferred_element_type=jnp.float32) + bq                  # (TQ, E)
    qh = jnp.transpose(q.reshape(TQ, h, d), (1, 0, 2)).astype(jnp.bfloat16)  # (h,TQ,d)

    # Scores: K cache is pre-transposed, so the batched-matmul RHS is already
    # in (contract, out) layout — no per-tile transpose.
    scores = jnp.einsum('hqd,hdk->hqk', qh, kT,
                        preferred_element_type=jnp.float32)               # (h,TQ,Sk)
    m = jnp.max(scores, axis=-1, keepdims=True)
    p = jnp.exp(scores - m)
    # TODO(synk): on v6e/v7x compute the exp in bf16 after the f32 max-subtract
    #             (bf16 EUP) when Sk is large; kept f32 here for v5e safety.
    attn = (p * pl.reciprocal(jnp.sum(p, axis=-1, keepdims=True),
                              approx=True)).astype(jnp.bfloat16)

    ctx = jnp.einsum('hqk,hkd->hqd', attn, v,
                     preferred_element_type=jnp.float32)                  # (h,TQ,d)

    # Output projection as h accumulating MXU matmuls — avoids the per-tile
    # (h,TQ,d) -> (TQ,E) XLU transpose/reshape copy.
    out = bo
    for head in range(h):
        out = out + jnp.dot(ctx[head].astype(jnp.bfloat16), Wo_ref[head],
                            preferred_element_type=jnp.float32)
    return out


# --------------------------------- kernel ----------------------------------

def decoder_layer_kernel(
    x_ref,
    kT_self_ref, v_self_ref, kT_cross_ref, v_cross_ref,
    Wq_ref, Wo_ref, Wq2_ref, Wo2_ref, W1_ref, W2_ref,
    vecs_ref, b1_ref,
    out_ref,
    *, h,
):
    vecs = vecs_ref[...]                 # (N_VECS, E) f32 packed biases / LN params
    x_tile = x_ref[...]                  # (TQ, E) f32

    # ---- self attention + residual + layernorm1 ----
    sa = _attend(x_tile, Wq_ref, vecs[_BQ:_BQ + 1], kT_self_ref[...],
                 v_self_ref[...], Wo_ref, vecs[_BO:_BO + 1], h)
    out1 = _layer_norm(x_tile + sa, vecs[_LN1G:_LN1G + 1], vecs[_LN1B:_LN1B + 1])

    # ---- cross attention + residual + layernorm2 ----
    ca = _attend(out1, Wq2_ref, vecs[_BQ2:_BQ2 + 1], kT_cross_ref[...],
                 v_cross_ref[...], Wo2_ref, vecs[_BO2:_BO2 + 1], h)
    out2 = _layer_norm(out1 + ca, vecs[_LN2G:_LN2G + 1], vecs[_LN2B:_LN2B + 1])

    # ---- FFNN + residual + layernorm3 (dropout = identity in eval) ----
    hid = jnp.maximum(
        jnp.dot(out2.astype(jnp.bfloat16), W1_ref[...],
                preferred_element_type=jnp.float32) + b1_ref[...], 0.0)
    ffn = jnp.dot(hid.astype(jnp.bfloat16), W2_ref[...],
                  preferred_element_type=jnp.float32) + vecs[_B2:_B2 + 1]
    out = _layer_norm(out2 + ffn, vecs[_LN3G:_LN3G + 1], vecs[_LN3B:_LN3B + 1])

    out_ref[...] = out.astype(out_ref.dtype)


# -------------------------------- wrapper -----------------------------------

def _tpu_vmem_capacity_bytes():
    try:
        return int(pltpu.get_tpu_info().vmem_capacity_bytes)
    except Exception:
        return 64 * 1024 * 1024   # conservative (v7x-class) fallback


def decoder_layer(x, encoder_output, params, h, *, tq=None):
    B, S, E = x.shape
    _, S_enc, _ = encoder_output.shape
    HID = params["W1"].shape[0]
    assert E % h == 0
    d = E // h
    scale = 1.0 / math.sqrt(d)

    # Generation-aware tile size / VMEM budget.
    vmem_cap = _tpu_vmem_capacity_bytes()
    if tq is None:
        tq = math.gcd(S, 128 if vmem_cap <= 64 * 1024 * 1024 else 256)
    assert S % tq == 0
    n_q = S // tq
    vmem_limit = min(int(vmem_cap * 3 // 4), 100 * 1024 * 1024)

    bf16, f32 = jnp.bfloat16, jnp.float32

    def WT(name, s=1.0):    # (out, in) -> (in, out), bf16, optional scale fold
        return (jnp.asarray(params[name]).T * s).astype(bf16)

    def vec(name, s=1.0):   # (1, n) f32
        return (jnp.asarray(params[name]).reshape(1, -1) * s).astype(f32)

    # --- precompute K/V caches with plain XLA matmuls (better MXU utilization
    #     than the in-kernel fill, removes enc from the kernel entirely) ---
    def kv_cache(inp, Wname, bname, transpose_k):
        y = jnp.einsum('bse,oe->bso', inp.astype(f32),
                       jnp.asarray(params[Wname])) + vec(bname)
        y = y.reshape(inp.shape[0], inp.shape[1], h, d)
        perm = (0, 2, 3, 1) if transpose_k else (0, 2, 1, 3)
        return jnp.transpose(y, perm).astype(bf16)

    kT_self = kv_cache(x, "Wk", "bk", True)                    # (B, h, d, S)
    v_self = kv_cache(x, "Wv", "bv", False)                    # (B, h, S, d)
    kT_cross = kv_cache(encoder_output, "Wk2", "bk2", True)    # (B, h, d, S_enc)
    v_cross = kv_cache(encoder_output, "Wv2", "bv2", False)    # (B, h, S_enc, d)
    cache_vals = [kT_self, v_self, kT_cross, v_cross]

    # --- weights: host-side transpose / reshape / scale-fold, cast to bf16 ---
    Wq_t = WT("Wq", scale)                                      # (E, E)
    Wq2_t = WT("Wq2", scale)                                    # (E, E)
    Wo_h = jnp.asarray(params["Wo"]).T.reshape(h, d, E).astype(bf16)
    Wo2_h = jnp.asarray(params["Wo2"]).T.reshape(h, d, E).astype(bf16)
    W1_t = WT("W1")                                             # (E, HID)
    W2_t = WT("W2")                                             # (HID, E)

    # Pack the 11 small (1, E) bias / LN vectors into one input (one BlockSpec).
    vecs = jnp.concatenate([
        vec("bq", scale), vec("bo"), vec("bq2", scale), vec("bo2"),
        vec("ln1_g"), vec("ln1_b"), vec("ln2_g"), vec("ln2_b"),
        vec("ln3_g"), vec("ln3_b"), vec("b2"),
    ], axis=0)                                                  # (N_VECS, E)
    assert vecs.shape == (_N_VECS, E)
    b1 = vec("b1")                                              # (1, HID)

    weight_vals = [Wq_t, Wo_h, Wq2_t, Wo2_h, W1_t, W2_t, vecs, b1]

    # --- BlockSpecs ---
    def const_spec(p):
        # Constant index map -> single-buffer (default double-buffering would
        # just double the resident VMEM for zero overlap benefit).
        n = p.ndim
        return pl.BlockSpec(p.shape, lambda bb, qq, _n=n: (0,) * _n,
                            pipeline_mode=pl.Buffered(1))

    def batch_spec(p):
        # Per-batch-element block of a (B, ...) cache.
        bs = (None,) + p.shape[1:]
        n = p.ndim - 1
        return pl.BlockSpec(bs, lambda bb, qq, _n=n: (bb,) + (0,) * _n)

    in_specs = (
        [pl.BlockSpec((None, tq, E), lambda bb, qq: (bb, qq, 0))]   # x (per tile)
        + [batch_spec(c) for c in cache_vals]
        + [const_spec(w) for w in weight_vals]
    )
    out_specs = pl.BlockSpec((None, tq, E), lambda bb, qq: (bb, qq, 0))

    # --- cost estimate (kernel only; K/V projections are precomputed) ---
    flops = int(B * (8 * S * E * E + 4 * S * E * (S + S_enc) + 4 * S * E * HID))
    transcendentals = int(B * h * S * (S + S_enc))
    bytes_accessed = int(
        x.size * 4 + B * S * E * 4
        + sum(int(c.size) * 2 for c in cache_vals)
        + sum(int(w.size) * w.dtype.itemsize for w in weight_vals))

    kernel = functools.partial(decoder_layer_kernel, h=h)

    return pl.pallas_call(
        kernel,
        out_shape=jax.ShapeDtypeStruct((B, S, E), x.dtype),
        grid=(B, n_q),
        in_specs=in_specs,
        out_specs=out_specs,
        compiler_params=pltpu.CompilerParams(
            dimension_semantics=("parallel", "parallel"),
            vmem_limit_bytes=vmem_limit),
        cost_estimate=pl.CostEstimate(
            flops=flops, transcendentals=transcendentals,
            bytes_accessed=bytes_accessed),
    )(x, *cache_vals, *weight_vals)


# ------------------------------ param init ----------------------------------

def init_params(key, embedding_dim, hidden_dim):
    E, H = embedding_dim, hidden_dim
    keys = jax.random.split(key, 32)
    it = iter(keys)

    def linear(out_f, in_f):
        bound = 1.0 / math.sqrt(in_f)
        Wm = jax.random.uniform(next(it), (out_f, in_f), jnp.float32, -bound, bound)
        bm = jax.random.uniform(next(it), (1, out_f), jnp.float32, -bound, bound)
        return Wm, bm

    p = {}
    for name in ["Wq", "Wk", "Wv", "Wo", "Wq2", "Wk2", "Wv2", "Wo2"]:
        Wm, bm = linear(E, E)
        p[name] = Wm
        p["b" + name[1:]] = bm
    p["W1"], p["b1"] = linear(H, E)
    p["W2"], p["b2"] = linear(E, H)
    for i in (1, 2, 3):
        p[f"ln{i}_g"] = jnp.ones((1, E), jnp.float32)
        p[f"ln{i}_b"] = jnp.zeros((1, E), jnp.float32)
    return p


# ------------------------------ JAX reference --------------------------------

def decoder_layer_ref(x, enc, p, h):
    def ln(v, g, b):
        m = jnp.mean(v, -1, keepdims=True)
        var = jnp.mean((v - m) ** 2, -1, keepdims=True)
        return (v - m) / jnp.sqrt(var + 1e-5) * g + b

    def mha(q_in, kv_in, Wq, bq, Wk, bk, Wv, bv, Wo, bo):
        B, Sq, E = q_in.shape
        Sk = kv_in.shape[1]
        d = E // h
        Q = (q_in @ Wq.T + bq).reshape(B, Sq, h, d).transpose(0, 2, 1, 3)
        K = (kv_in @ Wk.T + bk).reshape(B, Sk, h, d).transpose(0, 2, 1, 3)
        V = (kv_in @ Wv.T + bv).reshape(B, Sk, h, d).transpose(0, 2, 1, 3)
        s = jnp.einsum("bhqd,bhkd->bhqk", Q, K) / math.sqrt(d)
        a = jax.nn.softmax(s, axis=-1)
        c = jnp.einsum("bhqk,bhkd->bhqd", a, V).transpose(0, 2, 1, 3).reshape(B, Sq, E)
        return c @ Wo.T + bo

    o1 = ln(x + mha(x, x, p["Wq"], p["bq"], p["Wk"], p["bk"],
                    p["Wv"], p["bv"], p["Wo"], p["bo"]),
            p["ln1_g"], p["ln1_b"])
    o2 = ln(o1 + mha(o1, enc, p["Wq2"], p["bq2"], p["Wk2"], p["bk2"],
                     p["Wv2"], p["bv2"], p["Wo2"], p["bo2"]),
            p["ln2_g"], p["ln2_b"])
    ff = jnp.maximum(o2 @ p["W1"].T + p["b1"], 0.0) @ p["W2"].T + p["b2"]
    return ln(o2 + ff, p["ln3_g"], p["ln3_b"])


# --------------------------------- main --------------------------------------

if __name__ == "__main__":
    # Small but lane-dense config: E multiple of 128, d = E/h = 128,
    # S tiled into 2 query tiles per batch element so the second grid axis is
    # exercised.
    B, S, S_ENC, E, HID, H, TQ = 2, 16, 16, 256, 512, 2, 8

    key = jax.random.PRNGKey(0)
    kx, kenc, kp = jax.random.split(key, 3)
    x = jax.random.normal(kx, (B, S, E), jnp.float32)
    enc = jax.random.normal(kenc, (B, S_ENC, E), jnp.float32)
    params = init_params(kp, E, HID)

    out = decoder_layer(x, enc, params, H, tq=TQ)
    out = jax.block_until_ready(out)

    ref = decoder_layer_ref(x, enc, params, H)
    assert out.shape == (B, S, E)
    # bf16 matmul inputs (f32 accumulation) → relaxed tolerance vs f32 reference.
    assert jnp.allclose(out, ref, atol=5e-2, rtol=5e-2), float(jnp.max(jnp.abs(out - ref)))

    print("KERNEL_OK")
</pallas_src>

<mosaic_0001>
module attributes {stable_mosaic.version = 11 : i64} {
  func.func @decoder_layer_kernel(%arg0: i32, %arg1: i32, %arg2: memref<1x8x256xf32, #tpu.memory_space<vmem>>, %arg3: memref<1x2x128x16xbf16, #tpu.memory_space<vmem>>, %arg4: memref<1x2x16x128xbf16, #tpu.memory_space<vmem>>, %arg5: memref<1x2x128x16xbf16, #tpu.memory_space<vmem>>, %arg6: memref<1x2x16x128xbf16, #tpu.memory_space<vmem>>, %arg7: memref<256x256xbf16, #tpu.memory_space<vmem>>, %arg8: memref<2x128x256xbf16, #tpu.memory_space<vmem>>, %arg9: memref<256x256xbf16, #tpu.memory_space<vmem>>, %arg10: memref<2x128x256xbf16, #tpu.memory_space<vmem>>, %arg11: memref<256x512xbf16, #tpu.memory_space<vmem>>, %arg12: memref<512x256xbf16, #tpu.memory_space<vmem>>, %arg13: memref<11x256xf32, #tpu.memory_space<vmem>>, %arg14: memref<1x512xf32, #tpu.memory_space<vmem>>, %arg15: memref<1x8x256xf32, #tpu.memory_space<vmem>>) attributes {dimension_semantics = [#tpu.dimension_semantics<parallel>, #tpu.dimension_semantics<parallel>], iteration_bounds = array<i64: 2, 2>, scalar_prefetch = 0 : i64, scratch_operands = 0 : i64, tpu.core_type = #tpu.core_type<tc>, window_params = [{transform_indices = @transform_0, window_bounds = array<i64: 1, 8, 256>}, {transform_indices = @transform_1, window_bounds = array<i64: 1, 2, 128, 16>}, {transform_indices = @transform_2, window_bounds = array<i64: 1, 2, 16, 128>}, {transform_indices = @transform_3, window_bounds = array<i64: 1, 2, 128, 16>}, {transform_indices = @transform_4, window_bounds = array<i64: 1, 2, 16, 128>}, {pipeline_mode = #tpu.pipeline_mode<synchronous>, transform_indices = @transform_5, window_bounds = array<i64: 256, 256>}, {pipeline_mode = #tpu.pipeline_mode<synchronous>, transform_indices = @transform_6, window_bounds = array<i64: 2, 128, 256>}, {pipeline_mode = #tpu.pipeline_mode<synchronous>, transform_indices = @transform_7, window_bounds = array<i64: 256, 256>}, {pipeline_mode = #tpu.pipeline_mode<synchronous>, transform_indices = @transform_8, window_bounds = array<i64: 2, 128, 256>}, {pipeline_mode = #tpu.pipeline_mode<synchronous>, transform_indices = @transform_9, window_bounds = array<i64: 256, 512>}, {pipeline_mode = #tpu.pipeline_mode<synchronous>, transform_indices = @transform_10, window_bounds = array<i64: 512, 256>}, {pipeline_mode = #tpu.pipeline_mode<synchronous>, transform_indices = @transform_11, window_bounds = array<i64: 11, 256>}, {pipeline_mode = #tpu.pipeline_mode<synchronous>, transform_indices = @transform_12, window_bounds = array<i64: 1, 512>}, {transform_indices = @transform_13, window_bounds = array<i64: 1, 8, 256>}]} {
    %c0 = arith.constant 0 : index
    %c0_0 = arith.constant 0 : index
    %0 = vector.load %arg13[%c0, %c0_0] : memref<11x256xf32, #tpu.memory_space<vmem>>, vector<11x256xf32>
    %c0_1 = arith.constant 0 : index
    %c0_2 = arith.constant 0 : index
    %c0_3 = arith.constant 0 : index
    %1 = vector.load %arg2[%c0_1, %c0_2, %c0_3] : memref<1x8x256xf32, #tpu.memory_space<vmem>>, vector<1x8x256xf32>
    %2 = vector.shape_cast %1 : vector<1x8x256xf32> to vector<8x256xf32>
    %3 = vector.extract_strided_slice %0 {offsets = [0, 0], sizes = [1, 256], strides = [1, 1]} : vector<11x256xf32> to vector<1x256xf32>
    %c0_4 = arith.constant 0 : index
    %c0_5 = arith.constant 0 : index
    %c0_6 = arith.constant 0 : index
    %c0_7 = arith.constant 0 : index
    %4 = vector.load %arg3[%c0_4, %c0_5, %c0_6, %c0_7] : memref<1x2x128x16xbf16, #tpu.memory_space<vmem>>, vector<1x2x128x16xbf16>
    %5 = vector.shape_cast %4 : vector<1x2x128x16xbf16> to vector<2x128x16xbf16>
    %c0_8 = arith.constant 0 : index
    %c0_9 = arith.constant 0 : index
    %c0_10 = arith.constant 0 : index
    %c0_11 = arith.constant 0 : index
    %6 = vector.load %arg4[%c0_8, %c0_9, %c0_10, %c0_11] : memref<1x2x16x128xbf16, #tpu.memory_space<vmem>>, vector<1x2x16x128xbf16>
    %7 = vector.shape_cast %6 : vector<1x2x16x128xbf16> to vector<2x16x128xbf16>
    %8 = vector.extract_strided_slice %0 {offsets = [1, 0], sizes = [1, 256], strides = [1, 1]} : vector<11x256xf32> to vector<1x256xf32>
    %9 = arith.truncf %2 : vector<8x256xf32> to vector<8x256xbf16>
    %c0_12 = arith.constant 0 : index
    %c0_13 = arith.constant 0 : index
    %10 = vector.load %arg7[%c0_12, %c0_13] : memref<256x256xbf16, #tpu.memory_space<vmem>>, vector<256x256xbf16>
    %cst = arith.constant dense<0.000000e+00> : vector<8x256xf32>
    %11 = tpu.matmul %9, %10, %cst {dimension_numbers = #tpu.dot_dimension_numbers<[1], [0], [0], [1], [0, 0, 1, 1], [], []>} : vector<8x256xbf16>, vector<256x256xbf16>, vector<8x256xf32> -> vector<8x256xf32>
    %12 = vector.broadcast %3 : vector<1x256xf32> to vector<8x256xf32>
    %13 = arith.addf %11, %12 : vector<8x256xf32>
    %14 = vector.shape_cast %13 : vector<8x256xf32> to vector<8x2x128xf32>
    %15 = tpu.transpose %14, [1, 0, 2] : vector<8x2x128xf32> -> vector<2x8x128xf32>
    %16 = arith.truncf %15 : vector<2x8x128xf32> to vector<2x8x128xbf16>
    "tpu.trace_start"() <{level = 10 : i32, message = "hqd,hdk->hqk"}> : () -> ()
    %cst_14 = arith.constant dense<0.000000e+00> : vector<2x8x16xf32>
    %17 = tpu.matmul %16, %5, %cst_14 {dimension_numbers = #tpu.dot_dimension_numbers<[2], [1], [1], [2], [0, 0, 0, 1, 1, 2], [0], [0]>} : vector<2x8x128xbf16>, vector<2x128x16xbf16>, vector<2x8x16xf32> -> vector<2x8x16xf32>
    "tpu.trace_stop"() : () -> ()
    %cst_15 = arith.constant dense<0xFF800000> : vector<2x8xf32>
    %18 = vector.multi_reduction <maximumf>, %17, %cst_15 [2] : vector<2x8x16xf32> to vector<2x8xf32>
    %19 = vector.shape_cast %18 : vector<2x8xf32> to vector<2x8x1xf32>
    %20 = vector.broadcast %19 : vector<2x8x1xf32> to vector<2x8x16xf32>
    %21 = arith.subf %17, %20 : vector<2x8x16xf32>
    %22 = math.exp %21 : vector<2x8x16xf32>
    %cst_16 = arith.constant dense<0.000000e+00> : vector<2x8xf32>
    %23 = vector.multi_reduction <add>, %22, %cst_16 [2] : vector<2x8x16xf32> to vector<2x8xf32>
    %24 = vector.shape_cast %23 : vector<2x8xf32> to vector<2x8x1xf32>
    %25 = tpu.reciprocal %24 {approx = true} : vector<2x8x1xf32> -> vector<2x8x1xf32>
    %26 = vector.broadcast %25 : vector<2x8x1xf32> to vector<2x8x16xf32>
    %27 = arith.mulf %22, %26 : vector<2x8x16xf32>
    %28 = arith.truncf %27 : vector<2x8x16xf32> to vector<2x8x16xbf16>
    "tpu.trace_start"() <{level = 10 : i32, message = "hqk,hkd->hqd"}> : () -> ()
    %cst_17 = arith.constant dense<0.000000e+00> : vector<2x8x128xf32>
    %29 = tpu.matmul %28, %7, %cst_17 {dimension_numbers = #tpu.dot_dimension_numbers<[2], [1], [1], [2], [0, 0, 0, 1, 1, 2], [0], [0]>} : vector<2x8x16xbf16>, vector<2x16x128xbf16>, vector<2x8x128xf32> -> vector<2x8x128xf32>
    "tpu.trace_stop"() : () -> ()
    %30 = vector.extract_strided_slice %29 {offsets = [0, 0, 0], sizes = [1, 8, 128], strides = [1, 1, 1]} : vector<2x8x128xf32> to vector<1x8x128xf32>
    %31 = vector.shape_cast %30 : vector<1x8x128xf32> to vector<8x128xf32>
    %32 = arith.truncf %31 : vector<8x128xf32> to vector<8x128xbf16>
    %c0_18 = arith.constant 0 : index
    %c0_19 = arith.constant 0 : index
    %c0_20 = arith.constant 0 : index
    %33 = vector.load %arg8[%c0_18, %c0_19, %c0_20] : memref<2x128x256xbf16, #tpu.memory_space<vmem>>, vector<1x128x256xbf16>
    %34 = vector.shape_cast %33 : vector<1x128x256xbf16> to vector<128x256xbf16>
    %cst_21 = arith.constant dense<0.000000e+00> : vector<8x256xf32>
    %35 = tpu.matmul %32, %34, %cst_21 {dimension_numbers = #tpu.dot_dimension_numbers<[1], [0], [0], [1], [0, 0, 1, 1], [], []>} : vector<8x128xbf16>, vector<128x256xbf16>, vector<8x256xf32> -> vector<8x256xf32>
    %36 = vector.broadcast %8 : vector<1x256xf32> to vector<8x256xf32>
    %37 = arith.addf %36, %35 : vector<8x256xf32>
    %38 = vector.extract_strided_slice %29 {offsets = [1, 0, 0], sizes = [1, 8, 128], strides = [1, 1, 1]} : vector<2x8x128xf32> to vector<1x8x128xf32>
    %39 = vector.shape_cast %38 : vector<1x8x128xf32> to vector<8x128xf32>
    %40 = arith.truncf %39 : vector<8x128xf32> to vector<8x128xbf16>
    %c1 = arith.constant 1 : index
    %c0_22 = arith.constant 0 : index
    %c0_23 = arith.constant 0 : index
    %41 = vector.load %arg8[%c1, %c0_22, %c0_23] : memref<2x128x256xbf16, #tpu.memory_space<vmem>>, vector<1x128x256xbf16>
    %42 = vector.shape_cast %41 : vector<1x128x256xbf16> to vector<128x256xbf16>
    %cst_24 = arith.constant dense<0.000000e+00> : vector<8x256xf32>
    %43 = tpu.matmul %40, %42, %cst_24 {dimension_numbers = #tpu.dot_dimension_numbers<[1], [0], [0], [1], [0, 0, 1, 1], [], []>} : vector<8x128xbf16>, vector<128x256xbf16>, vector<8x256xf32> -> vector<8x256xf32>
    %44 = arith.addf %37, %43 : vector<8x256xf32>
    %45 = arith.addf %2, %44 : vector<8x256xf32>
    %46 = vector.extract_strided_slice %0 {offsets = [4, 0], sizes = [1, 256], strides = [1, 1]} : vector<11x256xf32> to vector<1x256xf32>
    %47 = vector.extract_strided_slice %0 {offsets = [5, 0], sizes = [1, 256], strides = [1, 1]} : vector<11x256xf32> to vector<1x256xf32>
    %cst_25 = arith.constant dense<0.000000e+00> : vector<8xf32>
    %48 = vector.multi_reduction <add>, %45, %cst_25 [1] : vector<8x256xf32> to vector<8xf32>
    %49 = vector.shape_cast %48 : vector<8xf32> to vector<8x1xf32>
    %cst_26 = arith.constant 2.560000e+02 : f32
    %50 = vector.broadcast %cst_26 : f32 to vector<8x1xf32>
    %51 = arith.divf %49, %50 : vector<8x1xf32>
    %52 = vector.broadcast %51 : vector<8x1xf32> to vector<8x256xf32>
    %53 = arith.subf %45, %52 : vector<8x256xf32>
    %54 = arith.mulf %53, %53 : vector<8x256xf32>
    %cst_27 = arith.constant dense<0.000000e+00> : vector<8xf32>
    %55 = vector.multi_reduction <add>, %54, %cst_27 [1] : vector<8x256xf32> to vector<8xf32>
    %56 = vector.shape_cast %55 : vector<8xf32> to vector<8x1xf32>
    %cst_28 = arith.constant 2.560000e+02 : f32
    %57 = vector.broadcast %cst_28 : f32 to vector<8x1xf32>
    %58 = arith.divf %56, %57 : vector<8x1xf32>
    %59 = vector.broadcast %51 : vector<8x1xf32> to vector<8x256xf32>
    %60 = arith.subf %45, %59 : vector<8x256xf32>
    %cst_29 = arith.constant 9.99999974E-6 : f32
    %61 = vector.broadcast %cst_29 : f32 to vector<8x1xf32>
    %62 = arith.addf %58, %61 : vector<8x1xf32>
    %63 = math.rsqrt %62 : vector<8x1xf32>
    %64 = vector.broadcast %63 : vector<8x1xf32> to vector<8x256xf32>
    %65 = arith.mulf %60, %64 : vector<8x256xf32>
    %66 = vector.broadcast %46 : vector<1x256xf32> to vector<8x256xf32>
    %67 = arith.mulf %65, %66 : vector<8x256xf32>
    %68 = vector.broadcast %47 : vector<1x256xf32> to vector<8x256xf32>
    %69 = arith.addf %67, %68 : vector<8x256xf32>
    %70 = vector.extract_strided_slice %0 {offsets = [2, 0], sizes = [1, 256], strides = [1, 1]} : vector<11x256xf32> to vector<1x256xf32>
    %c0_30 = arith.constant 0 : index
    %c0_31 = arith.constant 0 : index
    %c0_32 = arith.constant 0 : index
    %c0_33 = arith.constant 0 : index
    %71 = vector.load %arg5[%c0_30, %c0_31, %c0_32, %c0_33] : memref<1x2x128x16xbf16, #tpu.memory_space<vmem>>, vector<1x2x128x16xbf16>
    %72 = vector.shape_cast %71 : vector<1x2x128x16xbf16> to vector<2x128x16xbf16>
    %c0_34 = arith.constant 0 : index
    %c0_35 = arith.constant 0 : index
    %c0_36 = arith.constant 0 : index
    %c0_37 = arith.constant 0 : index
    %73 = vector.load %arg6[%c0_34, %c0_35, %c0_36, %c0_37] : memref<1x2x16x128xbf16, #tpu.memory_space<vmem>>, vector<1x2x16x128xbf16>
    %74 = vector.shape_cast %73 : vector<1x2x16x128xbf16> to vector<2x16x128xbf16>
    %75 = vector.extract_strided_slice %0 {offsets = [3, 0], sizes = [1, 256], strides = [1, 1]} : vector<11x256xf32> to vector<1x256xf32>
    %76 = arith.truncf %69 : vector<8x256xf32> to vector<8x256xbf16>
    %c0_38 = arith.constant 0 : index
    %c0_39 = arith.constant 0 : index
    %77 = vector.load %arg9[%c0_38, %c0_39] : memref<256x256xbf16, #tpu.memory_space<vmem>>, vector<256x256xbf16>
    %cst_40 = arith.constant dense<0.000000e+00> : vector<8x256xf32>
    %78 = tpu.matmul %76, %77, %cst_40 {dimension_numbers = #tpu.dot_dimension_numbers<[1], [0], [0], [1], [0, 0, 1, 1], [], []>} : vector<8x256xbf16>, vector<256x256xbf16>, vector<8x256xf32> -> vector<8x256xf32>
    %79 = vector.broadcast %70 : vector<1x256xf32> to vector<8x256xf32>
    %80 = arith.addf %78, %79 : vector<8x256xf32>
    %81 = vector.shape_cast %80 : vector<8x256xf32> to vector<8x2x128xf32>
    %82 = tpu.transpose %81, [1, 0, 2] : vector<8x2x128xf32> -> vector<2x8x128xf32>
    %83 = arith.truncf %82 : vector<2x8x128xf32> to vector<2x8x128xbf16>
    "tpu.trace_start"() <{level = 10 : i32, message = "hqd,hdk->hqk"}> : () -> ()
    %cst_41 = arith.constant dense<0.000000e+00> : vector<2x8x16xf32>
    %84 = tpu.matmul %83, %72, %cst_41 {dimension_numbers = #tpu.dot_dimension_numbers<[2], [1], [1], [2], [0, 0, 0, 1, 1, 2], [0], [0]>} : vector<2x8x128xbf16>, vector<2x128x16xbf16>, vector<2x8x16xf32> -> vector<2x8x16xf32>
    "tpu.trace_stop"() : () -> ()
    %cst_42 = arith.constant dense<0xFF800000> : vector<2x8xf32>
    %85 = vector.multi_reduction <maximumf>, %84, %cst_42 [2] : vector<2x8x16xf32> to vector<2x8xf32>
    %86 = vector.shape_cast %85 : vector<2x8xf32> to vector<2x8x1xf32>
    %87 = vector.broadcast %86 : vector<2x8x1xf32> to vector<2x8x16xf32>
    %88 = arith.subf %84, %87 : vector<2x8x16xf32>
    %89 = math.exp %88 : vector<2x8x16xf32>
    %cst_43 = arith.constant dense<0.000000e+00> : vector<2x8xf32>
    %90 = vector.multi_reduction <add>, %89, %cst_43 [2] : vector<2x8x16xf32> to vector<2x8xf32>
    %91 = vector.shape_cast %90 : vector<2x8xf32> to vector<2x8x1xf32>
    %92 = tpu.reciprocal %91 {approx = true} : vector<2x8x1xf32> -> vector<2x8x1xf32>
    %93 = vector.broadcast %92 : vector<2x8x1xf32> to vector<2x8x16xf32>
    %94 = arith.mulf %89, %93 : vector<2x8x16xf32>
    %95 = arith.truncf %94 : vector<2x8x16xf32> to vector<2x8x16xbf16>
    "tpu.trace_start"() <{level = 10 : i32, message = "hqk,hkd->hqd"}> : () -> ()
    %cst_44 = arith.constant dense<0.000000e+00> : vector<2x8x128xf32>
    %96 = tpu.matmul %95, %74, %cst_44 {dimension_numbers = #tpu.dot_dimension_numbers<[2], [1], [1], [2], [0, 0, 0, 1, 1, 2], [0], [0]>} : vector<2x8x16xbf16>, vector<2x16x128xbf16>, vector<2x8x128xf32> -> vector<2x8x128xf32>
    "tpu.trace_stop"() : () -> ()
    %97 = vector.extract_strided_slice %96 {offsets = [0, 0, 0], sizes = [1, 8, 128], strides = [1, 1, 1]} : vector<2x8x128xf32> to vector<1x8x128xf32>
    %98 = vector.shape_cast %97 : vector<1x8x128xf32> to vector<8x128xf32>
    %99 = arith.truncf %98 : vector<8x128xf32> to vector<8x128xbf16>
    %c0_45 = arith.constant 0 : index
    %c0_46 = arith.constant 0 : index
    %c0_47 = arith.constant 0 : index
    %100 = vector.load %arg10[%c0_45, %c0_46, %c0_47] : memref<2x128x256xbf16, #tpu.memory_space<vmem>>, vector<1x128x256xbf16>
    %101 = vector.shape_cast %100 : vector<1x128x256xbf16> to vector<128x256xbf16>
    %cst_48 = arith.constant dense<0.000000e+00> : vector<8x256xf32>
    %102 = tpu.matmul %99, %101, %cst_48 {dimension_numbers = #tpu.dot_dimension_numbers<[1], [0], [0], [1], [0, 0, 1, 1], [], []>} : vector<8x128xbf16>, vector<128x256xbf16>, vector<8x256xf32> -> vector<8x256xf32>
    %103 = vector.broadcast %75 : vector<1x256xf32> to vector<8x256xf32>
    %104 = arith.addf %103, %102 : vector<8x256xf32>
    %105 = vector.extract_strided_slice %96 {offsets = [1, 0, 0], sizes = [1, 8, 128], strides = [1, 1, 1]} : vector<2x8x128xf32> to vector<1x8x128xf32>
    %106 = vector.shape_cast %105 : vector<1x8x128xf32> to vector<8x128xf32>
    %107 = arith.truncf %106 : vector<8x128xf32> to vector<8x128xbf16>
    %c1_49 = arith.constant 1 : index
    %c0_50 = arith.constant 0 : index
    %c0_51 = arith.constant 0 : index
    %108 = vector.load %arg10[%c1_49, %c0_50, %c0_51] : memref<2x128x256xbf16, #tpu.memory_space<vmem>>, vector<1x128x256xbf16>
    %109 = vector.shape_cast %108 : vector<1x128x256xbf16> to vector<128x256xbf16>
    %cst_52 = arith.constant dense<0.000000e+00> : vector<8x256xf32>
    %110 = tpu.matmul %107, %109, %cst_52 {dimension_numbers = #tpu.dot_dimension_numbers<[1], [0], [0], [1], [0, 0, 1, 1], [], []>} : vector<8x128xbf16>, vector<128x256xbf16>, vector<8x256xf32> -> vector<8x256xf32>
    %111 = arith.addf %104, %110 : vector<8x256xf32>
    %112 = arith.addf %69, %111 : vector<8x256xf32>
    %113 = vector.extract_strided_slice %0 {offsets = [6, 0], sizes = [1, 256], strides = [1, 1]} : vector<11x256xf32> to vector<1x256xf32>
    %114 = vector.extract_strided_slice %0 {offsets = [7, 0], sizes = [1, 256], strides = [1, 1]} : vector<11x256xf32> to vector<1x256xf32>
    %cst_53 = arith.constant dense<0.000000e+00> : vector<8xf32>
    %115 = vector.multi_reduction <add>, %112, %cst_53 [1] : vector<8x256xf32> to vector<8xf32>
    %116 = vector.shape_cast %115 : vector<8xf32> to vector<8x1xf32>
    %cst_54 = arith.constant 2.560000e+02 : f32
    %117 = vector.broadcast %cst_54 : f32 to vector<8x1xf32>
    %118 = arith.divf %116, %117 : vector<8x1xf32>
    %119 = vector.broadcast %118 : vector<8x1xf32> to vector<8x256xf32>
    %120 = arith.subf %112, %119 : vector<8x256xf32>
    %121 = arith.mulf %120, %120 : vector<8x256xf32>
    %cst_55 = arith.constant dense<0.000000e+00> : vector<8xf32>
    %122 = vector.multi_reduction <add>, %121, %cst_55 [1] : vector<8x256xf32> to vector<8xf32>
    %123 = vector.shape_cast %122 : vector<8xf32> to vector<8x1xf32>
    %cst_56 = arith.constant 2.560000e+02 : f32
    %124 = vector.broadcast %cst_56 : f32 to vector<8x1xf32>
    %125 = arith.divf %123, %124 : vector<8x1xf32>
    %126 = vector.broadcast %118 : vector<8x1xf32> to vector<8x256xf32>
    %127 = arith.subf %112, %126 : vector<8x256xf32>
    %cst_57 = arith.constant 9.99999974E-6 : f32
    %128 = vector.broadcast %cst_57 : f32 to vector<8x1xf32>
    %129 = arith.addf %125, %128 : vector<8x1xf32>
    %130 = math.rsqrt %129 : vector<8x1xf32>
    %131 = vector.broadcast %130 : vector<8x1xf32> to vector<8x256xf32>
    %132 = arith.mulf %127, %131 : vector<8x256xf32>
    %133 = vector.broadcast %113 : vector<1x256xf32> to vector<8x256xf32>
    %134 = arith.mulf %132, %133 : vector<8x256xf32>
    %135 = vector.broadcast %114 : vector<1x256xf32> to vector<8x256xf32>
    %136 = arith.addf %134, %135 : vector<8x256xf32>
    %137 = arith.truncf %136 : vector<8x256xf32> to vector<8x256xbf16>
    %c0_58 = arith.constant 0 : index
    %c0_59 = arith.constant 0 : index
    %138 = vector.load %arg11[%c0_58, %c0_59] : memref<256x512xbf16, #tpu.memory_space<vmem>>, vector<256x512xbf16>
    %cst_60 = arith.constant dense<0.000000e+00> : vector<8x512xf32>
    %139 = tpu.matmul %137, %138, %cst_60 {dimension_numbers = #tpu.dot_dimension_numbers<[1], [0], [0], [1], [0, 0, 1, 1], [], []>} : vector<8x256xbf16>, vector<256x512xbf16>, vector<8x512xf32> -> vector<8x512xf32>
    %c0_61 = arith.constant 0 : index
    %c0_62 = arith.constant 0 : index
    %140 = vector.load %arg14[%c0_61, %c0_62] : memref<1x512xf32, #tpu.memory_space<vmem>>, vector<1x512xf32>
    %141 = vector.broadcast %140 : vector<1x512xf32> to vector<8x512xf32>
    %142 = arith.addf %139, %141 : vector<8x512xf32>
    %cst_63 = arith.constant 0.000000e+00 : f32
    %143 = vector.broadcast %cst_63 : f32 to vector<8x512xf32>
    %144 = arith.maximumf %142, %143 : vector<8x512xf32>
    %145 = arith.truncf %144 : vector<8x512xf32> to vector<8x512xbf16>
    %c0_64 = arith.constant 0 : index
    %c0_65 = arith.constant 0 : index
    %146 = vector.load %arg12[%c0_64, %c0_65] : memref<512x256xbf16, #tpu.memory_space<vmem>>, vector<512x256xbf16>
    %cst_66 = arith.constant dense<0.000000e+00> : vector<8x256xf32>
    %147 = tpu.matmul %145, %146, %cst_66 {dimension_numbers = #tpu.dot_dimension_numbers<[1], [0], [0], [1], [0, 0, 1, 1], [], []>} : vector<8x512xbf16>, vector<512x256xbf16>, vector<8x256xf32> -> vector<8x256xf32>
    %148 = vector.extract_strided_slice %0 {offsets = [10, 0], sizes = [1, 256], strides = [1, 1]} : vector<11x256xf32> to vector<1x256xf32>
    %149 = vector.broadcast %148 : vector<1x256xf32> to vector<8x256xf32>
    %150 = arith.addf %147, %149 : vector<8x256xf32>
    %151 = arith.addf %136, %150 : vector<8x256xf32>
    %152 = vector.extract_strided_slice %0 {offsets = [8, 0], sizes = [1, 256], strides = [1, 1]} : vector<11x256xf32> to vector<1x256xf32>
    %153 = vector.extract_strided_slice %0 {offsets = [9, 0], sizes = [1, 256], strides = [1, 1]} : vector<11x256xf32> to vector<1x256xf32>
    %cst_67 = arith.constant dense<0.000000e+00> : vector<8xf32>
    %154 = vector.multi_reduction <add>, %151, %cst_67 [1] : vector<8x256xf32> to vector<8xf32>
    %155 = vector.shape_cast %154 : vector<8xf32> to vector<8x1xf32>
    %cst_68 = arith.constant 2.560000e+02 : f32
    %156 = vector.broadcast %cst_68 : f32 to vector<8x1xf32>
    %157 = arith.divf %155, %156 : vector<8x1xf32>
    %158 = vector.broadcast %157 : vector<8x1xf32> to vector<8x256xf32>
    %159 = arith.subf %151, %158 : vector<8x256xf32>
    %160 = arith.mulf %159, %159 : vector<8x256xf32>
    %cst_69 = arith.constant dense<0.000000e+00> : vector<8xf32>
    %161 = vector.multi_reduction <add>, %160, %cst_69 [1] : vector<8x256xf32> to vector<8xf32>
    %162 = vector.shape_cast %161 : vector<8xf32> to vector<8x1xf32>
    %cst_70 = arith.constant 2.560000e+02 : f32
    %163 = vector.broadcast %cst_70 : f32 to vector<8x1xf32>
    %164 = arith.divf %162, %163 : vector<8x1xf32>
    %165 = vector.broadcast %157 : vector<8x1xf32> to vector<8x256xf32>
    %166 = arith.subf %151, %165 : vector<8x256xf32>
    %cst_71 = arith.constant 9.99999974E-6 : f32
    %167 = vector.broadcast %cst_71 : f32 to vector<8x1xf32>
    %168 = arith.addf %164, %167 : vector<8x1xf32>
    %169 = math.rsqrt %168 : vector<8x1xf32>
    %170 = vector.broadcast %169 : vector<8x1xf32> to vector<8x256xf32>
    %171 = arith.mulf %166, %170 : vector<8x256xf32>
    %172 = vector.broadcast %152 : vector<1x256xf32> to vector<8x256xf32>
    %173 = arith.mulf %171, %172 : vector<8x256xf32>
    %174 = vector.broadcast %153 : vector<1x256xf32> to vector<8x256xf32>
    %175 = arith.addf %173, %174 : vector<8x256xf32>
    %c0_72 = arith.constant 0 : index
    %c0_73 = arith.constant 0 : index
    %c0_74 = arith.constant 0 : index
    %176 = vector.load %arg15[%c0_72, %c0_73, %c0_74] : memref<1x8x256xf32, #tpu.memory_space<vmem>>, vector<1x8x256xf32>
    %177 = vector.shape_cast %176 : vector<1x8x256xf32> to vector<8x256xf32>
    %178 = vector.shape_cast %175 : vector<8x256xf32> to vector<1x8x256xf32>
    tpu.vector_store %arg15[%c0_72, %c0_73, %c0_74], %178 {strides = array<i32>} : memref<1x8x256xf32, #tpu.memory_space<vmem>>, vector<1x8x256xf32>,
    return
  }
  func.func @transform_0(%arg0: i32, %arg1: i32) -> (i32, i32, i32) {
    %c0_i32 = arith.constant 0 : i32
    %c0_i32_0 = arith.constant 0 : i32
    return %arg0, %arg1, %c0_i32 : i32, i32, i32
  }
  func.func @transform_1(%arg0: i32, %arg1: i32) -> (i32, i32, i32, i32) {
    %c0_i32 = arith.constant 0 : i32
    %c0_i32_0 = arith.constant 0 : i32
    %c0_i32_1 = arith.constant 0 : i32
    %c0_i32_2 = arith.constant 0 : i32
    return %arg0, %c0_i32, %c0_i32_0, %c0_i32_1 : i32, i32, i32, i32
  }
  func.func @transform_2(%arg0: i32, %arg1: i32) -> (i32, i32, i32, i32) {
    %c0_i32 = arith.constant 0 : i32
    %c0_i32_0 = arith.constant 0 : i32
    %c0_i32_1 = arith.constant 0 : i32
    %c0_i32_2 = arith.constant 0 : i32
    return %arg0, %c0_i32, %c0_i32_0, %c0_i32_1 : i32, i32, i32, i32
  }
  func.func @transform_3(%arg0: i32, %arg1: i32) -> (i32, i32, i32, i32) {
    %c0_i32 = arith.constant 0 : i32
    %c0_i32_0 = arith.constant 0 : i32
    %c0_i32_1 = arith.constant 0 : i32
    %c0_i32_2 = arith.constant 0 : i32
    return %arg0, %c0_i32, %c0_i32_0, %c0_i32_1 : i32, i32, i32, i32
  }
  func.func @transform_4(%arg0: i32, %arg1: i32) -> (i32, i32, i32, i32) {
    %c0_i32 = arith.constant 0 : i32
    %c0_i32_0 = arith.constant 0 : i32
    %c0_i32_1 = arith.constant 0 : i32
    %c0_i32_2 = arith.constant 0 : i32
    return %arg0, %c0_i32, %c0_i32_0, %c0_i32_1 : i32, i32, i32, i32
  }
  func.func @transform_5(%arg0: i32, %arg1: i32) -> (i32, i32) {
    %c0_i32 = arith.constant 0 : i32
    %c0_i32_0 = arith.constant 0 : i32
    %c0_i32_1 = arith.constant 0 : i32
    return %c0_i32, %c0_i32_0 : i32, i32
  }
  func.func @transform_6(%arg0: i32, %arg1: i32) -> (i32, i32, i32) {
    %c0_i32 = arith.constant 0 : i32
    %c0_i32_0 = arith.constant 0 : i32
    %c0_i32_1 = arith.constant 0 : i32
    %c0_i32_2 = arith.constant 0 : i32
    return %c0_i32, %c0_i32_0, %c0_i32_1 : i32, i32, i32
  }
  func.func @transform_7(%arg0: i32, %arg1: i32) -> (i32, i32) {
    %c0_i32 = arith.constant 0 : i32
    %c0_i32_0 = arith.constant 0 : i32
    %c0_i32_1 = arith.constant 0 : i32
    return %c0_i32, %c0_i32_0 : i32, i32
  }
  func.func @transform_8(%arg0: i32, %arg1: i32) -> (i32, i32, i32) {
    %c0_i32 = arith.constant 0 : i32
    %c0_i32_0 = arith.constant 0 : i32
    %c0_i32_1 = arith.constant 0 : i32
    %c0_i32_2 = arith.constant 0 : i32
    return %c0_i32, %c0_i32_0, %c0_i32_1 : i32, i32, i32
  }
  func.func @transform_9(%arg0: i32, %arg1: i32) -> (i32, i32) {
    %c0_i32 = arith.constant 0 : i32
    %c0_i32_0 = arith.constant 0 : i32
    %c0_i32_1 = arith.constant 0 : i32
    return %c0_i32, %c0_i32_0 : i32, i32
  }
  func.func @transform_10(%arg0: i32, %arg1: i32) -> (i32, i32) {
    %c0_i32 = arith.constant 0 : i32
    %c0_i32_0 = arith.constant 0 : i32
    %c0_i32_1 = arith.constant 0 : i32
    return %c0_i32, %c0_i32_0 : i32, i32
  }
  func.func @transform_11(%arg0: i32, %arg1: i32) -> (i32, i32) {
    %c0_i32 = arith.constant 0 : i32
    %c0_i32_0 = arith.constant 0 : i32
    %c0_i32_1 = arith.constant 0 : i32
    return %c0_i32, %c0_i32_0 : i32, i32
  }
  func.func @transform_12(%arg0: i32, %arg1: i32) -> (i32, i32) {
    %c0_i32 = arith.constant 0 : i32
    %c0_i32_0 = arith.constant 0 : i32
    %c0_i32_1 = arith.constant 0 : i32
    return %c0_i32, %c0_i32_0 : i32, i32
  }
  func.func @transform_13(%arg0: i32, %arg1: i32) -> (i32, i32, i32) {
    %c0_i32 = arith.constant 0 : i32
    %c0_i32_0 = arith.constant 0 : i32
    return %arg0, %arg1, %c0_i32 : i32, i32, i32
  }
}

</mosaic_0001>

<bundles_post_ra>
// kernel: tpu_custom_call.1
= control target key start
LH: loop header
LB: loop body
LE: loop exit
PB: predicated region body
PF: predicated region fallthrough
CT: control target
= control target key end

     0   :  { %s6357_s0 = inlined_call_operand.vmem [shape: f32[2,16,256], index: 0, kind: input, shape index: {}]   ;;  %s6358_s1 = inlined_call_operand.vmem [shape: bf16[2,2,128,16], index: 1, kind: input, shape index: {}]   ;;  %s6359_s2 = inlined_call_operand.vmem [shape: bf16[2,2,16,128], index: 2, kind: input, shape index: {}]   ;;  %s6360_s3 = inlined_call_operand.vmem [shape: bf16[2,2,128,16], index: 3, kind: input, shape index: {}]   ;;  %s6361_s4 = inlined_call_operand.hbm [shape: bf16[2,2,16,128], index: 4, kind: input, shape index: {}]   ;;  %s6362_s5 = inlined_call_operand.hbm [shape: bf16[256,256], index: 5, kind: input, shape index: {}]   ;;  %s6363_s6 = inlined_call_operand.hbm [shape: bf16[2,128,256], index: 6, kind: input, shape index: {}]   ;;  %s6364_s7 = inlined_call_operand.hbm [shape: bf16[256,256], index: 7, kind: input, shape index: {}]   ;;  %s6365_s8 = inlined_call_operand.hbm [shape: bf16[2,128,256], index: 8, kind: input, shape index: {}]   ;;  %s6366_s9 = inlined_call_operand.vmem [shape: bf16[256,512], index: 9, kind: input, shape index: {}]   ;;  %s6367_s10 = inlined_call_operand.hbm [shape: bf16[512,256], index: 10, kind: input, shape index: {}]   ;;  %s6368_s11 = inlined_call_operand.hbm [shape: f32[11,256], index: 11, kind: input, shape index: {}]   ;;  %s6369_s12 = inlined_call_operand.vmem [shape: f32[1,512], index: 12, kind: input, shape index: {}]   ;;  %s6370_s13 = inlined_call_operand.hbm [shape: f32[2,16,256], index: 13, kind: output, shape index: {}]  }
   0x1   :  { %6382 = sst [smem:[#allocation25_spill]] %s6357_s0 }
   0x2   :  { %6383 = sst [smem:[#allocation26_spill]] %s6358_s1 }
   0x3   :  { %6384 = sst [smem:[#allocation27_spill]] %s6359_s2 }
   0x4   :  { %6385 = sst [smem:[#allocation28_spill]] %s6360_s3 }
   0x5   :  { %6386 = sst [smem:[#allocation29_spill]] %s6361_s4 }
   0x6   :  { %6387 = sst [smem:[#allocation30_spill]] %s6362_s5 }
   0x7   :  { %6388 = sst [smem:[#allocation31_spill]] %s6363_s6 }
   0x8   :  { %6389 = sst [smem:[#allocation32_spill]] %s6364_s7 }
   0x9   :  { %6390 = sst [smem:[#allocation33_spill]] %s6365_s8 }
   0xa   :  { %6391 = sst [smem:[#allocation34_spill]] %s6366_s9 }
   0xb   :  { %6392 = sst [smem:[#allocation35_spill]] %s6367_s10 }
   0xc   :  { %6393 = sst [smem:[#allocation36_spill]] %s6368_s11 }
   0xd   :  { %6394 = sst [smem:[#allocation37_spill]] %s6369_s12 }
   0xe   :  { %6395 = sst [smem:[#allocation38_spill]] %s6370_s13 }
   0xf   :  { %18 = vsyncpa [#allocation3], 0 }
  0x10   :  { %20 = vsyncpa [#allocation3 + $0x1], 0 }
  0x11   :  { %21 = vsyncpa [#allocation6], 0 }
  0x12   :  { %22 = vsyncpa [#allocation9], 0 }
  0x13   :  { %23 = vsyncpa [#allocation12], 0 }
  0x14   :  { %24 = vsyncpa [#allocation4], 0 }
  0x15   :  { %26 = vsyncpa [#allocation4 + $0x1], 0  ;;  %s5465_s25 = smov 0   ;;  %s5467_s26 = smov 0  }
  0x16   :  { %s5469_s27 = smov 0   ;;  %s5471_s28 = smov 0  }
  0x17   :  { %s5473_s29 = smov 0   ;;  %s5475_s30 = smov 0  }
  0x18   :  { %s5477_s14 = smov 0   ;;  %s5479_s15 = smov 0  }
  0x19   :  { %s5481_s16 = smov 0   ;;  %s5483_s17 = smov 0  }
  0x1a   :  { %s5485_s18 = smov 0  }
  0x1b LB: > { %6396 = sst [smem:[#allocation20_spill]] %s5334_s25  ;;  %s3934_s19 = sadd.s32 4294967295, %s5374_s18   ;;  %s5374_s18 = sphi %s5485_s18, %s32_s18   ;;  %s5370_s17 = sphi %s5483_s17, %s6448_s17   ;;  %s5366_s16 = sphi %s5481_s16, %s6447_s16   ;;  %s5362_s15 = sphi %s5479_s15, %s6446_s15   ;;  %s5358_s14 = sphi %s5477_s14, %s6445_s14   ;;  %s5354_s30 = sphi %s5475_s30, %s6444_s30   ;;  %s5350_s29 = sphi %s5473_s29, %s6443_s29   ;;  %s5346_s28 = sphi %s5471_s28, %s6442_s28   ;;  %s5342_s27 = sphi %s5469_s27, %s6441_s27   ;;  %s5338_s26 = sphi %s5467_s26, %s6440_s26   ;;  %s5334_s25 = sphi %s5465_s25, %s6439_s25  }
  0x1c   : > { %6397 = sst [smem:[#allocation21_spill]] %s5358_s14  ;;  %p3936_p0 = scmp.ge.s32.totalorder %s5374_s18, 1 }
  0x1d   : > { %6398 = sst [smem:[#allocation22_spill]] %s5362_s15  ;;  %p5522_p1 = scmp.eq.s32.totalorder %s3934_s19, 0 }
  0x1e   : > { %p5526_p2 = scmp.eq.s32.totalorder %s3934_s19, 3  ;;  %p377_p3 = scmp.lt.s32.totalorder %s5374_s18, 5 }
  0x1f   : > { %s6399_s20 = scalar_select %p5522_p1, 1, 0 }
  0x20   : > { %s6400_s21 = scalar_select %p5526_p2, 1, 0 }
  0x21   : > { %p5531_p4 = pnand %p3936_p0, %p377_p3  ;;  %s5376_s23 = smov [#allocation5]  }
  0x22   : > { %6401 = sst [smem:[#allocation23_spill]] %s6400_s21  ;;  %s389_s24 = sshll.u32 %s5376_s23, 4  ;;  %s5535_s24 = int_to_ptr.vmem [resolvable:$true] %s389_s24 }
  0x23   : > { %s6402_s22 = scalar_select %p5531_p4, 1, 0 }
  0x24   : > { %p4451_p5 = pneg %p5531_p4  ;;  %s5377_s19 = smov [#allocation8]  }
  0x25   : > { %6403 = sst [smem:[#allocation24_spill]] %s6402_s22  ;;  %s415_s12 = sshll.u32 %s5377_s19, 4  ;;  %s5545_s12 = int_to_ptr.vmem [resolvable:$true] %s415_s12 }
  0x26   : > { %p5541_p6 = pnand %p4451_p5, %p5522_p1  ;;  %s5378_s9 = smov [#allocation11]  }
  0x27   : > { %s444_s2 = sshll.u32 %s5378_s9, 4  ;;  %s6405_s5 = sld [smem:[#allocation30_spill]]  ;;  %s5547_s2 = int_to_ptr.vmem [resolvable:$true] %s444_s2 }
  0x28   : > { %p5557_p8 = pneg %p5541_p6 }
  0x2d   : > { %s5042_s1 = scalar_lea.hbm %s6405_s5, 4096 }
  0x2e   : > { %p5043_p7 = scmp.ne.s32.totalorder %s6405_s5, %s5042_s1  ;;  %p5049_p11 = scmp.lt.u32.totalorder %s5042_s1, %s6405_s5 }
  0x30   : > { %p5045_p9 = pnand %p5557_p8, %p5043_p7 }
  0x32   : > { %p5046_p10 = pneg %p5045_p9 }
  0x34   : > { %p5051_p12 = pnand %p5049_p11, %p5046_p10 }
  0x36   : > { %5054 = shalt.err (!%p5051_p12)
}
  0x37   : > { %s5055_s0 = scalar_lea.vmem %s5535_s24, 4096  ;;  %p5063_p5 = scmp.lt.s32.totalorder %s5535_s24, %s5535_s24 }
  0x38   : > { %p5056_p13 = scmp.ne.s32.totalorder %s5535_s24, %s5055_s0  ;;  %p5064_p4 = scmp.lt.s32.totalorder %s5055_s0, %s5055_s0 }
  0x3a   : > { %p5058_p0 = pnand %p5056_p13, %p5557_p8  ;;  %p5065_p7 = por %p5064_p4, %p5063_p5 }
  0x3c   : > { %p5059_p3 = pneg %p5058_p0 }
  0x3e   : > { %p5066_p9 = pnand %p5065_p7, %p5059_p3 }
  0x40   : > { %5069 = shalt.err (!%p5066_p9)
}
  0x41   : > { %s5379_s3 = smov 128   ;;  %s5380_s1 = smov 8  }
  0x42   : > { %4454 = dma.hbm_to_vmem [thread:$0]  (!%p5541_p6), %s6405_s5, 4096, %s5535_s24, [#allocation6], %s5379_s3, %s5379_s3, %s5380_s1  }
  0x43   : > { %s6407_s7 = sld [smem:[#allocation32_spill]] }
  0x49   : > { %s5070_s0 = scalar_lea.hbm %s6407_s7, 4096 }
  0x4a   : > { %p5071_p4 = scmp.ne.s32.totalorder %s6407_s7, %s5070_s0  ;;  %p5077_p12 = scmp.lt.u32.totalorder %s5070_s0, %s6407_s7 }
  0x4c   : > { %p5073_p10 = pnand %p5071_p4, %p5557_p8 }
  0x4e   : > { %p5074_p11 = pneg %p5073_p10 }
  0x50   : > { %p5079_p13 = pnand %p5077_p12, %p5074_p11 }
  0x52   : > { %5082 = shalt.err (!%p5079_p13)
}
  0x53   : > { %s5083_s24 = scalar_lea.vmem %s5545_s12, 4096  ;;  %p5091_p7 = scmp.lt.s32.totalorder %s5545_s12, %s5545_s12 }
  0x54   : > { %p5084_p0 = scmp.ne.s32.totalorder %s5545_s12, %s5083_s24  ;;  %p5092_p9 = scmp.lt.s32.totalorder %s5083_s24, %s5083_s24 }
  0x56   : > { %p5086_p3 = pnand %p5084_p0, %p5557_p8  ;;  %p5093_p4 = por %p5092_p9, %p5091_p7 }
  0x58   : > { %p5087_p5 = pneg %p5086_p3 }
  0x5a   : > { %p5094_p10 = pnand %p5093_p4, %p5087_p5 }
  0x5c   : > { %5097 = shalt.err (!%p5094_p10)
}
  0x5d   : > { %4460 = dma.hbm_to_vmem [thread:$0]  (!%p5541_p6), %s6407_s7, 4096, %s5545_s12, [#allocation9], %s5379_s3, %s5379_s3, %s5380_s1  }
  0x5e   : > { %s6408_s10 = sld [smem:[#allocation35_spill]] }
  0x64   : > { %s5098_s14 = scalar_lea.hbm %s6408_s10, 8192 }
  0x65   : > { %p5099_p11 = scmp.ne.s32.totalorder %s6408_s10, %s5098_s14  ;;  %p5105_p0 = scmp.lt.u32.totalorder %s5098_s14, %s6408_s10 }
  0x67   : > { %p5101_p12 = pnand %p5099_p11, %p5557_p8 }
  0x69   : > { %p5102_p13 = pneg %p5101_p12 }
  0x6b   : > { %p5107_p3 = pnand %p5105_p0, %p5102_p13 }
  0x6d   : > { %5110 = shalt.err (!%p5107_p3)
}
  0x6e   : > { %s5111_s12 = scalar_lea.vmem %s5547_s2, 8192  ;;  %p5119_p4 = scmp.lt.s32.totalorder %s5547_s2, %s5547_s2 }
  0x6f   : > { %p5112_p5 = scmp.ne.s32.totalorder %s5547_s2, %s5111_s12  ;;  %p5120_p10 = scmp.lt.s32.totalorder %s5111_s12, %s5111_s12 }
  0x71   : > { %p5114_p7 = pnand %p5112_p5, %p5557_p8  ;;  %p5121_p11 = por %p5120_p10, %p5119_p4 }
  0x73   : > { %p5115_p9 = pneg %p5114_p7 }
  0x75   : > { %p5122_p12 = pnand %p5121_p11, %p5115_p9 }
  0x77   : > { %5125 = shalt.err (!%p5122_p12)
}
  0x78   : > { %4466 = dma.hbm_to_vmem [thread:$0]  (!%p5541_p6), %s6408_s10, 8192, %s5547_s2, [#allocation12], %s5379_s3, %s5379_s3, %s5380_s1  }
  0x79   : > { %s5381_s25 = smov [#allocation7]   ;;  %s5382_s22 = smov [#allocation10]  }
  0x7a   : > { %s402_s21 = sshll.u32 %s5381_s25, 4  ;;  %s428_s14 = sshll.u32 %s5382_s22, 4  ;;  %s403_s21 = int_to_ptr.vmem [resolvable:$true] %s402_s21  ;;  %s5633_s14 = int_to_ptr.vmem [resolvable:$true] %s428_s14 }
  0x7b   : > { %s6409_s6 = sld [smem:[#allocation31_spill]] }
  0x81   : > { %s5126_s19 = scalar_lea.hbm %s6409_s6, 4096 }
  0x82   : > { %p5127_p13 = scmp.ne.s32.totalorder %s6409_s6, %s5126_s19  ;;  %p5133_p5 = scmp.lt.u32.totalorder %s5126_s19, %s6409_s6 }
  0x84   : > { %p5129_p0 = pnand %p5127_p13, %p5557_p8 }
  0x86   : > { %p5130_p3 = pneg %p5129_p0 }
  0x88   : > { %p5135_p7 = pnand %p5133_p5, %p5130_p3 }
  0x8a   : > { %5138 = shalt.err (!%p5135_p7)
}
  0x8b   : > { %s5139_s4 = scalar_lea.vmem %s403_s21, 4096  ;;  %p5147_p11 = scmp.lt.s32.totalorder %s403_s21, %s403_s21 }
  0x8c   : > { %p5140_p9 = scmp.ne.s32.totalorder %s403_s21, %s5139_s4  ;;  %p5148_p12 = scmp.lt.s32.totalorder %s5139_s4, %s5139_s4 }
  0x8e   : > { %p5142_p4 = pnand %p5140_p9, %p5557_p8  ;;  %p5149_p2 = por %p5148_p12, %p5147_p11 }
  0x90   : > { %p5143_p10 = pneg %p5142_p4 }
  0x92   : > { %p5150_p1 = pnand %p5149_p2, %p5143_p10 }
  0x94   : > { %5153 = shalt.err (!%p5150_p1)
}
  0x95   : > { %4457 = dma.hbm_to_vmem [thread:$0]  (!%p5541_p6), %s6409_s6, 4096, %s403_s21, [#allocation6], %s5379_s3, %s5379_s3, %s5380_s1  }
  0x96   : > { %s6410_s8 = sld [smem:[#allocation33_spill]] }
  0x9c   : > { %s5154_s19 = scalar_lea.hbm %s6410_s8, 4096 }
  0x9d   : > { %p5155_p13 = scmp.ne.s32.totalorder %s6410_s8, %s5154_s19  ;;  %p5161_p0 = scmp.lt.u32.totalorder %s5154_s19, %s6410_s8 }
  0x9f   : > { %p5157_p1 = pnand %p5155_p13, %p5557_p8 }
  0xa1   : > { %p5158_p2 = pneg %p5157_p1 }
  0xa3   : > { %p5163_p3 = pnand %p5161_p0, %p5158_p2 }
  0xa5   : > { %5166 = shalt.err (!%p5163_p3)
}
  0xa6   : > { %s5167_s21 = scalar_lea.vmem %s5633_s14, 4096  ;;  %p5175_p4 = scmp.lt.s32.totalorder %s5633_s14, %s5633_s14 }
  0xa7   : > { %p5168_p5 = scmp.ne.s32.totalorder %s5633_s14, %s5167_s21  ;;  %p5176_p10 = scmp.lt.s32.totalorder %s5167_s21, %s5167_s21 }
  0xa9   : > { %p5170_p7 = pnand %p5168_p5, %p5557_p8  ;;  %p5177_p11 = por %p5176_p10, %p5175_p4 }
  0xab   : > { %p5171_p9 = pneg %p5170_p7 }
  0xad   : > { %p5178_p12 = pnand %p5177_p11, %p5171_p9 }
  0xaf   : > { %5181 = shalt.err (!%p5178_p12)
}
  0xb0   : > { %4463 = dma.hbm_to_vmem [thread:$0]  (!%p5541_p6), %s6410_s8, 4096, %s5633_s14, [#allocation9], %s5379_s3, %s5379_s3, %s5380_s1  }
  0xb1   : > { %s5383_s22 = smov [#allocation13]   ;;  %s6411_s11 = sld [smem:[#allocation36_spill]] }
  0xb2   : > { %s457_s23 = sshll.u32 %s5383_s22, 4  ;;  %s458_s23 = int_to_ptr.vmem [resolvable:$true] %s457_s23 }
  0xb7   : > { %s5182_s0 = scalar_lea.hbm %s6411_s11, 512 }
  0xb8   : > { %p5183_p13 = scmp.ne.s32.totalorder %s6411_s11, %s5182_s0  ;;  %p5189_p0 = scmp.lt.u32.totalorder %s5182_s0, %s6411_s11 }
  0xba   : > { %p5185_p1 = pnand %p5183_p13, %p5557_p8 }
  0xbc   : > { %p5186_p2 = pneg %p5185_p1 }
  0xbe   : > { %p5191_p3 = pnand %p5189_p0, %p5186_p2 }
  0xc0   : > { %5194 = shalt.err (!%p5191_p3)
}
  0xc1   : > { %s5195_s3 = scalar_lea.vmem %s458_s23, 512  ;;  %p5203_p4 = scmp.lt.s32.totalorder %s458_s23, %s458_s23 }
  0xc2   : > { %p5196_p5 = scmp.ne.s32.totalorder %s458_s23, %s5195_s3  ;;  %p5204_p10 = scmp.lt.s32.totalorder %s5195_s3, %s5195_s3 }
  0xc4   : > { %p5198_p7 = pnand %p5196_p5, %p5557_p8  ;;  %p5205_p11 = por %p5204_p10, %p5203_p4 }
  0xc6   : > { %p5199_p9 = pneg %p5198_p7 }
  0xc8   : > { %p5206_p12 = pnand %p5205_p11, %p5199_p9 }
  0xca   : > { %5209 = shalt.err (!%p5206_p12)
}
  0xcb   : > { %s5384_s1 = smov 256   ;;  %s5385_s15 = smov 16  }
  0xcc   : > { %4469 = dma.hbm_to_vmem [thread:$0]  (!%p5541_p6), %s6411_s11, 512, %s458_s23, [#allocation12], %s5384_s1, %s5384_s1, %s5385_s15  }
  0xcd   : > { %s3935_s25 = sadd.s32 4294967294, %s5374_s18   ;;  %s41_s22 = sadd.s32 1, %s5366_s16 }
  0xce   : > { %s6412_s9 = sld [smem:[#allocation20_spill]]  ;;  %s44_s19 = sadd.s32 1, %s5370_s17 }
  0xcf   : > { %p42_p8 = scmp.ge.s32.totalorder %s41_s22, 2  ;;  %s157_s0 = sadd.s32 1, %s5354_s30 }
  0xd0   : > { %p164_p13 = scmp.ne.s32.totalorder %s5354_s30, %s5350_s29  ;;  %p165_p1 = scmp.eq.s32.totalorder %s5374_s18, 0 }
  0xd1   : > { %s6450_s22 = smov (%p42_p8, %s41_s22), 0  ;;  %s6413_s13 = sld [smem:[#allocation23_spill]] }
  0xd2   : > { %s6452_s19 = smov (!%p42_p8, %s44_s19), %s5370_s17  ;;  %p5710_p2 = por %p165_p1, %p164_p13 }
  0xd3   : > { %p170_p6 = scmp.ne.s32.totalorder %s5350_s29, %s5346_s28  ;;  %p46_p0 = scmp.ge.s32.totalorder %s6452_s19, 2 }
  0xd4   : > { %s349_s12 = ssub.s32 %s5366_s16, %s6450_s22  ;;  %p6415_p3 = scmp.ne.s32.totalorder %s6399_s20, 0 }
  0xd5   : > { %s353_s2 = sadd.s32 1, %s5342_s27  ;;  %s6454_s19 = smov (%p46_p0, %s6452_s19), 0 }
  0xd6   : > { %p5720_p5 = por %p6415_p3, %p170_p6  ;;  %p363_p7 = scmp.ne.s32.totalorder %s5342_s27, %s5338_s26 }
  0xd7   : > { %p369_p9 = scmp.ne.s32.totalorder %s5338_s26, %s6412_s9  ;;  %s154_s21 = ssub.s32 %s5370_s17, %s6454_s19 }
  0xd8   : > { %p370_p4 = scmp.eq.s32.totalorder %s3935_s25, 3  ;;  %p155_p10 = scmp.eq.s32.totalorder %s154_s21, 0 }
  0xd9   : > { %s350_s28 = sor.u32 %s349_s12, %s154_s21  ;;  %p6417_p12 = scmp.ne.s32.totalorder %s6413_s13, 0 }
  0xda   : > { %p351_p11 = scmp.eq.s32.totalorder %s350_s28, 0  ;;  %p5745_p13 = por %p370_p4, %p369_p9 }
  0xdb   : > { %p5735_p8 = por %p6417_p12, %p363_p7  ;;  %p4484_p1 = scmp.lt.s32.totalorder %s5374_s18, 4 }
  0xdc   : > { %s5740_s1 = scalar_select %p155_p10, %s5354_s30, %s157_s0  }
  0xdd   : > { %s6418_s3 = scalar_select %p5735_p8, 1, 0 }
  0xde   : > { %s5743_s15 = scalar_select %p351_p11, %s5342_s27, %s353_s2  }
  0xdf   : > { %s6419_s14 = scalar_select %p5745_p13, 1, 0 }
  0xe0   : > { %s510_s4 = sand.u32 1, %s5354_s30   ;;  %s4271_s9 = sshll.u32 %s5370_s17, 8 }
  0xe1   : > { %s3944_s25 = sshll.u32 %s510_s4, 4  ;;  %s6420_s21 = sld [smem:[#allocation29_spill]] }
  0xe2   : > { %s514_s0 = scalar_lea.vmem [#allocation2], %s3944_s25  ;;  %p5759_p6 = pnand %p4484_p1, %p5710_p2 }
  0xe3   : > { %s521_s2 = sshll.u32 %s514_s0, 4  ;;  %s5765_s6 = scalar_lea.sflag [#allocation3], %s510_s4  ;;  %s5763_s2 = int_to_ptr.vmem [resolvable:$true] %s521_s2 }
  0xe4   : > { %p5212_p3 = pneg %p5759_p6 }
  0xe7   : > { %s5755_s13 = scalar_lea.hbm %s6420_s21, %s4271_s9  ;;  %s5215_s25 = scalar_lea.hbm %s6420_s21, 512 }
  0xe8   : > { %s5210_s5 = scalar_lea.hbm %s5755_s13, 256  ;;  %p5216_p2 = scmp.lt.u32.totalorder %s5755_s13, %s6420_s21 }
  0xe9   : > { %p5211_p0 = scmp.ne.s32.totalorder %s5755_s13, %s5210_s5  ;;  %p5217_p4 = scmp.lt.u32.totalorder %s5215_s25, %s5210_s5 }
  0xea   : > { %p5219_p11 = scmp.lt.u32.totalorder %s5210_s5, %s5755_s13 }
  0xeb   : > { %p5213_p7 = pnand %p5212_p3, %p5211_p0  ;;  %p5218_p10 = por %p5217_p4, %p5216_p2 }
  0xed   : > { %p5214_p9 = pneg %p5213_p7  ;;  %p5220_p12 = por %p5219_p11, %p5218_p10 }
  0xef   : > { %p5221_p1 = pnand %p5220_p12, %p5214_p9 }
  0xf1   : > { %5224 = shalt.err (!%p5221_p1)
}
  0xf2   : > { %s5225_s4 = scalar_lea.vmem %s5763_s2, 256  ;;  %s5386_s9 = smov [#allocation2]  }
  0xf3   : > { %p5226_p0 = scmp.ne.s32.totalorder %s5763_s2, %s5225_s4  ;;  %s5230_s23 = sshll.u32 %s5386_s9, 4  ;;  %s5231_s23 = int_to_ptr.vmem [resolvable:$false] %s5230_s23 }
  0xf4   : > { %s5232_s12 = scalar_lea.vmem %s5231_s23, 512  ;;  %p5233_p8 = scmp.lt.s32.totalorder %s5763_s2, %s5231_s23 }
  0xf5   : > { %p5228_p7 = pnand %p5226_p0, %p5212_p3  ;;  %p5234_p2 = scmp.lt.s32.totalorder %s5232_s12, %s5225_s4 }
  0xf7   : > { %p5229_p13 = pneg %p5228_p7  ;;  %p5235_p4 = por %p5234_p2, %p5233_p8 }
  0xf9   : > { %p5236_p10 = pnand %p5235_p4, %p5229_p13 }
  0xfb   : > { %5239 = shalt.err (!%p5236_p10)
}
  0xfc   : > { %s5387_s5 = smov 64   ;;  %s5388_s25 = smov 4  }
  0xfd   : > { %4473 = dma.hbm_to_vmem [thread:$0]  (!%p5759_p6), %s5755_s13, 256, %s5763_s2, %s5765_s6, %s5387_s5, %s5387_s5, %s5388_s25  }
  0xfe   : > { %s6422_s0 = sld [smem:[#allocation24_spill]] }
 0x104   : > { %p6423_p3 = scmp.ne.s32.totalorder %s6422_s0, 0 }
 0x105   : > { %s535_s9 = sand.u32 (!%p6423_p3), 1, %s5350_s29  }
 0x106   : > { %533 = sbr.rel (%p6423_p3) target bundleno = 4199 (0x1067), region = 72  ;;  %s5796_s7 = sshll.u32 (!%p6423_p3), %s535_s9, 4 }
 0x107   : > { %s536_s4 = scalar_lea.sflag (!%p6423_p3), [#allocation3], %s535_s9 }
 0x10d   : > { %5313 = dma.done.wait (%p5720_p5), %s536_s4, 256  }
 0x10e   : > { %5315 = vsyncadd (%p5720_p5), %s536_s4, 4294967040  ;;  %p6424_p8 = scmp.ne.s32.totalorder %s6399_s20, 0 }
 0x110   : > { %5317 = dma.done.wait (%p6424_p8), [#allocation6], 8192  }
 0x111   : > { %5319 = vsyncadd (%p6424_p8), [#allocation6], 4294959104 }
 0x112   : > { %5321 = dma.done.wait (%p6424_p8), [#allocation9], 8192  }
 0x113   : > { %5323 = vsyncadd (%p6424_p8), [#allocation9], 4294959104 }
 0x114   : > { %5325 = dma.done.wait (%p6424_p8), [#allocation12], 8704  }
 0x115   : > { %5327 = vsyncadd (%p6424_p8), [#allocation12], 4294958592  ;;  %s6425_s6 = sld [smem:[#allocation22_spill]]  ;;  %s6426_s24 = sld [smem:[#allocation21_spill]]  ;;  %v5389_v0 = vmov 0.0   ;;  %vm5390_vm0 = vmmov 0   ;;  %v731_v45 = vlaneseq }
 0x116   : > { %4319 = vmatprep.subr.bf16.mxu1 %v5389_v0  ;;  %v4597_v1 = vld [vmem:[#allocation5 + $0x4] ss:$8 sps:$4 sm:$0xff]   ;;  %v4599_v2 = vld [vmem:[#allocation5] ss:$8 sps:$4 sm:$0xff]   ;;  %v4600_v3 = vld [vmem:[#allocation5 + $0x14] ss:$8 sps:$4 sm:$0xff]   ;;  %4335 = vmatprep.mubr.msk.bf16.mxu1 %vm5390_vm0, %v5389_v0 }
 0x117   : > { %899 = vmatprep.subr.bf16.mxu0 %v4597_v1  ;;  %v4602_v4 = vld [vmem:[#allocation5 + $0x10] ss:$8 sps:$4 sm:$0xff]   ;;  %v4603_v5 = vld [vmem:[#allocation5 + $0x24] ss:$8 sps:$4 sm:$0xff]   ;;  %v4605_v6 = vld [vmem:[#allocation5 + $0x20] ss:$8 sps:$4 sm:$0xff]  }
 0x118   : > { %900 = vmatpush1.bf16.msra.mxu0 %v4599_v2  ;;  %v4606_v7 = vld [vmem:[#allocation5 + $0x34] ss:$8 sps:$4 sm:$0xff]   ;;  %v4608_v8 = vld [vmem:[#allocation5 + $0x30] ss:$8 sps:$4 sm:$0xff]   ;;  %v4609_v9 = vld [vmem:[#allocation5 + $0x44] ss:$8 sps:$4 sm:$0xff]  }
 0x119   : > { %901 = vmatprep.subr.bf16.mxu0 %v4600_v3  ;;  %v4611_v10 = vld [vmem:[#allocation5 + $0x40] ss:$8 sps:$4 sm:$0xff]   ;;  %v4612_v11 = vld [vmem:[#allocation5 + $0x54] ss:$8 sps:$4 sm:$0xff]   ;;  %s6427_s4 = sld [smem:[#allocation25_spill]]  ;;  %s6428_s10 = sld [smem:[#allocation26_spill]] }
 0x11a   : > { %v4614_v12 = vld [vmem:[#allocation5 + $0x50] ss:$8 sps:$4 sm:$0xff]   ;;  %v4615_v13 = vld [vmem:[#allocation5 + $0x64] ss:$8 sps:$4 sm:$0xff]   ;;  %v4617_v14 = vld [vmem:[#allocation5 + $0x60] ss:$8 sps:$4 sm:$0xff]  }
 0x11b   : > { %p630_p5 = scmp.lt.s32.totalorder %s6425_s6, 1  ;;  %p632_p13 = scmp.lt.s32.totalorder %s6426_s24, 1  ;;  %v4618_v18 = vld [vmem:[#allocation5 + $0x74] ss:$8 sps:$4 sm:$0xff]   ;;  %v4620_v20 = vld [vmem:[#allocation5 + $0x70] ss:$8 sps:$4 sm:$0xff]  }
 0x11c   : > { %902 = vmatpush1.bf16.msra.mxu0 %v4602_v4  ;;  %v4621_v21 = vld [vmem:[#allocation5 + $0x84] ss:$8 sps:$4 sm:$0xff]   ;;  %v4623_v22 = vld [vmem:[#allocation5 + $0x80] ss:$8 sps:$4 sm:$0xff]   ;;  %v4624_v23 = vld [vmem:[#allocation5 + $0x94] ss:$8 sps:$4 sm:$0xff]  }
 0x11d   : > { %s5819_s13 = scalar_select %p630_p5, %s6425_s6, 1  ;;  %903 = vmatprep.subr.bf16.mxu0 %v4603_v5  ;;  %v4626_v24 = vld [vmem:[#allocation5 + $0x90] ss:$8 sps:$4 sm:$0xff]   ;;  %v4627_v25 = vld [vmem:[#allocation5 + $0xa4] ss:$8 sps:$4 sm:$0xff]   ;;  %v5870_v46 = vshrl.u32 %v731_v45, 7 }
 0x11e   : > { %s633_s20 = scalar_select %p632_p13, %s6426_s24, 1  ;;  %v4629_v26 = vld [vmem:[#allocation5 + $0xa0] ss:$8 sps:$4 sm:$0xff]   ;;  %v4630_v27 = vld [vmem:[#allocation5 + $0xb4] ss:$8 sps:$4 sm:$0xff]   ;;  %vm1234_vm1 = vcmask 130048  }
 0x11f   : > { %s3957_s28 = sshll.u32 %s5819_s13, 2  ;;  %s4272_s25 = sshll.u32 %s5819_s13, 7  ;;  %v4632_v28 = vld [vmem:[#allocation5 + $0xb0] ss:$8 sps:$4 sm:$0xff]   ;;  %v4633_v29 = vld [vmem:[#allocation5 + $0xc4] ss:$8 sps:$4 sm:$0xff]  }
 0x120   : > { %s3956_s2 = sshll.u32 %s633_s20, 1  ;;  %904 = vmatpush1.bf16.msra.mxu0 %v4605_v6  ;;  %s5834_s11 = scalar_lea.vmem %s6428_s10, %s4272_s25  ;;  %v4635_v30 = vld [vmem:[#allocation5 + $0xc0] ss:$8 sps:$4 sm:$0xff]   ;;  %v4636_v31 = vld [vmem:[#allocation5 + $0xd4] ss:$8 sps:$4 sm:$0xff]   ;;  %v5873_v49 = vsub.s32 0, %v5870_v46 }
 0x121   : > { %905 = vmatprep.subr.bf16.mxu0 %v4606_v7  ;;  %s636_s12 = sadd.s32 %s3957_s28, %s3956_s2  ;;  %v4645_v17 = vld [vmem:[%s5834_s11] sm:$0xff]   ;;  %v4646_v19 = vld [vmem:[%s5834_s11 + $0x8] sm:$0xff]   ;;  %v4638_v32 = vld [vmem:[#allocation5 + $0xd0] ss:$8 sps:$4 sm:$0xff]   ;;  %s6429_s2 = sld [smem:[#allocation28_spill]] }
 0x122   : > { %s3958_s5 = sshll.u32 %s636_s12, 3  ;;  %4320 = vmatpush3.bf16.msra.mxu1 %v4645_v17  ;;  %v4639_v33 = vld [vmem:[#allocation5 + $0xe4] ss:$8 sps:$4 sm:$0xff]   ;;  %v4641_v34 = vld [vmem:[#allocation5 + $0xe0] ss:$8 sps:$4 sm:$0xff]   ;;  %v4647_v39 = vld [vmem:[%s5834_s11 + $0x10] sm:$0xff]  }
 0x123   : > { %s5827_s23 = scalar_lea.vmem %s6427_s4, %s3958_s5  ;;  %4321 = vmatprep.subr.bf16.mxu1 %v5389_v0  ;;  %v4642_v35 = vld [vmem:[#allocation5 + $0xf4] ss:$8 sps:$4 sm:$0xff]   ;;  %v4644_v36 = vld [vmem:[#allocation5 + $0xf0] ss:$8 sps:$4 sm:$0xff]   ;;  %v4649_v41 = vld [vmem:[%s5834_s11 + $0x20] sm:$0xff]   ;;  %s6433_s4 = sld [smem:[#allocation34_spill]] }
 0x124   : > { %906 = vmatpush1.bf16.msra.mxu0 %v4608_v8  ;;  %v660_v15 = vld [vmem:[%s5827_s23 + $0x8] sm:$0xff]  ;;  %v5849_v37 = vld [vmem:[%s5827_s23] sm:$0xff]  ;;  %v4648_v40 = vld [vmem:[%s5834_s11 + $0x18] sm:$0xff]   ;;  %v5391_v47 = vmov 1983009808   ;;  %s6434_s10 = sld [smem:[#allocation37_spill]] }
 0x125   : > { %907 = vmatprep.subr.bf16.mxu0 %v4609_v9  ;;  %v698_v16 = vpack.c.bf16 %v660_v15, %v660_v15  ;;  %v697_v38 = vpack.c.bf16 %v5849_v37, %v5849_v37  ;;  %v4650_v42 = vld [vmem:[%s5834_s11 + $0x28] sm:$0xff]   ;;  %v4651_v43 = vld [vmem:[%s5834_s11 + $0x30] sm:$0xff]   ;;  %v4652_v44 = vld [vmem:[%s5834_s11 + $0x38] sm:$0xff]   ;;  %v942_v48 = vunpack.c.l.s4 %v5391_v47  ;;  %v5392_v53 = vmov 1934713408   ;;  %s4267_s12 = sshll.u32 %s6425_s6, 2 }
 0x126   : > { %4322 = vmatpush3.bf16.msra.mxu1 %v4646_v19  ;;  %v5875_v50 = vld [vmem:[#allocation13] sm:$0xff]  ;;  %v5877_v52 = vld [vmem:[#allocation13 + $0x8] sm:$0xff]  ;;  %v973_v54 = vunpack.c.l.s4 %v5392_v53  ;;  %p6436_p9 = scmp.ne.s32.totalorder %s6418_s3, 0  ;;  %s5394_s8 = smov [#allocation14]  }
 0x127   : > { %931 = vmatprep.mubr.bf16.mxu0 %v698_v16  ;;  %4323 = vmatprep.subr.bf16.mxu1 %v5389_v0  ;;  %s5846_s28 = scalar_lea.vmem %s6429_s2, %s4272_s25  ;;  %v943_v51 = vunpack.c.0.s8 %v942_v48  ;;  %v734_v55 = vrot.slane %v5875_v50, %v5873_v49  ;;  %v738_v56 = vrot.slane %v5877_v52, %v5873_v49  ;;  %s6430_s25 = sld [smem:[#allocation27_spill]] }
 0x128   : > { %908 = vmatpush1.bf16.msra.mxu0 %v4611_v10  ;;  %v974_v59 = vunpack.c.0.s8 %v973_v54  ;;  %s627_s2 = sand.u32 1, %s5338_s26  }
 0x129   : > { %909 = vmatprep.subr.bf16.mxu0 %v4612_v11  ;;  %v5884_v57 = vsub.s32 %v943_v51, %v5870_v46  ;;  %s3720_s9 = scalar_lea.sflag [#allocation4], %s627_s2 }
 0x12a   : > { %4324 = vmatpush3.bf16.msra.mxu1 %v4647_v39  ;;  %v5891_v6 = vsub.s32 %v974_v59, %v5870_v46  ;;  %v4659_v39 = vld [vmem:[%s5834_s11 + $0x70] sm:$0xff]  }
 0x12b   : > { %4325 = vmatprep.subr.bf16.mxu1 %v5389_v0 }
 0x12c   : > { %910 = vmatpush1.bf16.msra.mxu0 %v4614_v12 }
 0x12d   : > { %911 = vmatprep.subr.bf16.mxu0 %v4615_v13 }
 0x12e   : > { %4326 = vmatpush3.bf16.msra.mxu1 %v4648_v40  ;;  %v4660_v40 = vld [vmem:[%s5834_s11 + $0x78] sm:$0xff]  }
 0x12f   : > { %4327 = vmatprep.subr.bf16.mxu1 %v5389_v0 }
 0x130   : > { %912 = vmatpush1.bf16.msra.mxu0 %v4617_v14 }
 0x131   : > { %913 = vmatprep.subr.bf16.mxu0 %v4618_v18 }
 0x132   : > { %4328 = vmatpush3.bf16.msra.mxu1 %v4649_v41 }
 0x133   : > { %4329 = vmatprep.subr.bf16.mxu1 %v5389_v0 }
 0x134   : > { %914 = vmatpush1.bf16.msra.mxu0 %v4620_v20 }
 0x135   : > { %915 = vmatprep.subr.bf16.mxu0 %v4621_v21 }
 0x136   : > { %4330 = vmatpush3.bf16.msra.mxu1 %v4650_v42 }
 0x137   : > { %4331 = vmatprep.subr.bf16.mxu1 %v5389_v0 }
 0x138   : > { %916 = vmatpush1.bf16.msra.mxu0 %v4623_v22 }
 0x139   : > { %917 = vmatprep.subr.bf16.mxu0 %v4624_v23 }
 0x13a   : > { %4332 = vmatpush3.bf16.msra.mxu1 %v4651_v43 }
 0x13b   : > { %4333 = vmatprep.subr.bf16.mxu1 %v5389_v0 }
 0x13c   : > { %918 = vmatpush1.bf16.msra.mxu0 %v4626_v24 }
 0x13d   : > { %919 = vmatprep.subr.bf16.mxu0 %v4627_v25 }
 0x13e   : > { %4334 = vmatpush3.bf16.msra.mxu1 %v4652_v44 }
 0x13f   : > { %4339 = vmatprep.subr.bf16.mxu1 %v5389_v0 }
 0x140   : > { %920 = vmatpush1.bf16.msra.mxu0 %v4629_v26 }
 0x141   : > { %921 = vmatprep.subr.bf16.mxu0 %v4630_v27 }
 0x144   : > { %922 = vmatpush1.bf16.msra.mxu0 %v4632_v28 }
 0x145   : > { %923 = vmatprep.subr.bf16.mxu0 %v4633_v29 }
 0x148   : > { %924 = vmatpush1.bf16.msra.mxu0 %v4635_v30 }
 0x149   : > { %925 = vmatprep.subr.bf16.mxu0 %v4636_v31  ;;  %v4653_v31 = vld [vmem:[%s5834_s11 + $0x40] sm:$0xff]  }
 0x14c   : > { %926 = vmatpush1.bf16.msra.mxu0 %v4638_v32 }
 0x14d   : > { %927 = vmatprep.subr.bf16.mxu0 %v4639_v33  ;;  %v4654_v33 = vld [vmem:[%s5834_s11 + $0x48] sm:$0xff]  }
 0x150   : > { %928 = vmatpush1.bf16.msra.mxu0 %v4641_v34  ;;  %v4655_v34 = vld [vmem:[%s5834_s11 + $0x50] sm:$0xff]  }
 0x151   : > { %929 = vmatprep.subr.bf16.mxu0 %v4642_v35  ;;  %v4656_v35 = vld [vmem:[%s5834_s11 + $0x58] sm:$0xff]  }
 0x154   : > { %930 = vmatpush1.bf16.msra.mxu0 %v4644_v36  ;;  %v4657_v36 = vld [vmem:[%s5834_s11 + $0x60] sm:$0xff]  }
 0x155   : > { %4359 = vmatprep.subr.bf16.mxu0 %v5389_v0 }
 0x157   : > { %932 = vmatmul.mubr.bf16.vlgmr.msra.gmra.mrb[0].mxu0 %v697_v38  ;;  %v4658_v38 = vld [vmem:[%s5834_s11 + $0x68] sm:$0xff]   ;;  %s4273_s11 = sshll.u32 %s5819_s13, 4 }
 0x158   : > { %4361 = vmatprep.mubr.msk.bf16.mxu0 %vm5390_vm0, %v5389_v0  ;;  %s648_s0 = scalar_lea.vmem %s6430_s25, %s4273_s11  ;;  %s4266_s11 = sshll.u32 %s6426_s24, 1 }
 0x159   : > { %s3732_s5 = sadd.s32 %s4267_s12, %s4266_s11 }
 0x15a   : > { %s4268_s25 = sshll.u32 %s3732_s5, 7 }
 0x22a   : > { %v933_v58 = vpop.f32.mrb[0].mxu0 }
 0x22b   : > { %v934_v60 = vadd.f32 %v933_v58, %v734_v55  ;;  %v935_v61 = vpop.f32.mrb[1].mxu0 }
 0x22c   : > { %v936_v62 = vadd.f32 %v935_v61, %v738_v56  ;;  %v937_v63 = vpop.f32.mrb[2].mxu0 }
 0x22d   : > { %v940_v1 = vcombine.high %v934_v60, %v5389_v0  ;;  %v947_v2 = vrot.slane %v934_v60, %v5884_v57  ;;  %v938_v3 = vpop.f32.mrb[3].mxu0 }
 0x22e   : > { %v955_v4 = vcombine.high %v936_v62, %v5389_v0  ;;  %v962_v5 = vrot.slane %v936_v62, %v5884_v57 }
 0x22f   : > { %v954_v7 = vrot.slane %v940_v1, %v5884_v57 }
 0x230   : > { %v969_v8 = vrot.slane %v955_v4, %v5884_v57  ;;  %v970_v9 = vcombine.low %v947_v2, %v962_v5  ;;  %v971_v10 = vcombine.high %v947_v2, %v962_v5  ;;  %v4661_v2 = vld [vmem:[%s648_s0] sm:$0xff]   ;;  %v4662_v5 = vld [vmem:[%s648_s0 + $0x8] sm:$0xff]  }
 0x231   : > { %4360 = vmatpush3.bf16.msra.mxu0 %v4661_v2 }
 0x232   : > { %v978_v11 = vrot.slane %v970_v9, %v5891_v6  ;;  %v985_v12 = vrot.slane %v971_v10, %v5891_v6  ;;  %v986_v13 = vcombine.low %v954_v7, %v969_v8  ;;  %v987_v14 = vcombine.high %v954_v7, %v969_v8  ;;  %v4665_v7 = vld [vmem:[#allocation7 + $0x4] ss:$8 sps:$4 sm:$0xff]  }
 0x233   : > { %1454 = vmatprep.subr.bf16.mxu0 %v4665_v7 }
 0x234   : > { %v994_v15 = vrot.slane %v986_v13, %v5891_v6  ;;  %v1001_v16 = vrot.slane %v987_v14, %v5891_v6  ;;  %v1006_v17 = vcombine.low %v978_v11, %v985_v12  ;;  %v3997_v18 = vcombine.high %v978_v11, %v985_v12  ;;  %v4663_v11 = vld [vmem:[#allocation7] ss:$8 sps:$4 sm:$0xff]   ;;  %v4668_v13 = vld [vmem:[#allocation7 + $0x14] ss:$8 sps:$4 sm:$0xff]   ;;  %v4666_v14 = vld [vmem:[#allocation7 + $0x10] ss:$8 sps:$4 sm:$0xff]  }
 0x236   : > { %v1022_v19 = vcombine.low %v994_v15, %v1001_v16  ;;  %v3998_v20 = vcombine.high %v994_v15, %v1001_v16  ;;  %v1013_v21 = vrot.slane %v1006_v17, %v5884_v57  ;;  %v1021_v22 = vrot.slane %v3997_v18, %v5884_v57  ;;  %v4671_v15 = vld [vmem:[#allocation7 + $0x24] ss:$8 sps:$4 sm:$0xff]   ;;  %v4669_v16 = vld [vmem:[#allocation7 + $0x20] ss:$8 sps:$4 sm:$0xff]   ;;  %v4674_v17 = vld [vmem:[#allocation7 + $0x34] ss:$8 sps:$4 sm:$0xff]  }
 0x237   : > { %v4672_v18 = vld [vmem:[#allocation7 + $0x30] ss:$8 sps:$4 sm:$0xff]  }
 0x238   : > { %v1029_v23 = vrot.slane %v1022_v19, %v5884_v57  ;;  %v1037_v24 = vrot.slane %v3998_v20, %v5884_v57  ;;  %v1038_v25 = vcombine.low %v1013_v21, %v1021_v22  ;;  %v4677_v19 = vld [vmem:[#allocation7 + $0x44] ss:$8 sps:$4 sm:$0xff]   ;;  %v4675_v20 = vld [vmem:[#allocation7 + $0x40] ss:$8 sps:$4 sm:$0xff]   ;;  %v4680_v21 = vld [vmem:[#allocation7 + $0x54] ss:$8 sps:$4 sm:$0xff]  }
 0x23a   : > { %v1046_v26 = vcombine.low %v1029_v23, %v1037_v24  ;;  %v1045_v27 = vrot.slane %v1038_v25, %v5891_v6  ;;  %v4678_v23 = vld [vmem:[#allocation7 + $0x50] ss:$8 sps:$4 sm:$0xff]   ;;  %v4683_v24 = vld [vmem:[#allocation7 + $0x64] ss:$8 sps:$4 sm:$0xff]   ;;  %v4681_v25 = vld [vmem:[#allocation7 + $0x60] ss:$8 sps:$4 sm:$0xff]  }
 0x23c   : > { %v1053_v28 = vrot.slane %v1046_v26, %v5891_v6  ;;  %v4686_v26 = vld [vmem:[#allocation7 + $0x74] ss:$8 sps:$4 sm:$0xff]  }
 0x23e   : > { %v1054_v29 = vcombine.low %v1045_v27, %v1053_v28  ;;  %v1055_v30 = vcombine.high %v1045_v27, %v1053_v28  ;;  %v4684_v27 = vld [vmem:[#allocation7 + $0x70] ss:$8 sps:$4 sm:$0xff]  }
 0x240   : > { %v1056_v32 = vpack.c.bf16 %v1054_v29, %v1054_v29  ;;  %v1057_v41 = vpack.c.bf16 %v1055_v30, %v1055_v30 }
 0x242   : > { %4336 = vmatmul.mubr.bf16.vlgmr.msra.gmra.mrb[0].mxu1 %v1056_v32  ;;  %v4687_v32 = vld [vmem:[#allocation7 + $0x80] ss:$8 sps:$4 sm:$0xff]  }
 0x243   : > { %4340 = vmatpush3.bf16.msra.mxu1 %v4653_v31  ;;  %4355 = vmatprep.mubr.msk.bf16.mxu1 %vm5390_vm0, %v5389_v0  ;;  %v4689_v31 = vld [vmem:[#allocation7 + $0x84] ss:$8 sps:$4 sm:$0xff]  }
 0x244   : > { %4341 = vmatprep.subr.bf16.mxu1 %v5389_v0 }
 0x247   : > { %4342 = vmatpush3.bf16.msra.mxu1 %v4654_v33  ;;  %v5393_v33 = vmov 0  }
 0x248   : > { %4343 = vmatprep.subr.bf16.mxu1 %v5389_v0 }
 0x24b   : > { %4344 = vmatpush3.bf16.msra.mxu1 %v4655_v34  ;;  %v4692_v34 = vld [vmem:[#allocation7 + $0x94] ss:$8 sps:$4 sm:$0xff]  }
 0x24c   : > { %4345 = vmatprep.subr.bf16.mxu1 %v5389_v0 }
 0x24f   : > { %4346 = vmatpush3.bf16.msra.mxu1 %v4656_v35  ;;  %v4690_v35 = vld [vmem:[#allocation7 + $0x90] ss:$8 sps:$4 sm:$0xff]  }
 0x250   : > { %4347 = vmatprep.subr.bf16.mxu1 %v5389_v0 }
 0x253   : > { %4348 = vmatpush3.bf16.msra.mxu1 %v4657_v36  ;;  %v4695_v36 = vld [vmem:[#allocation7 + $0xa4] ss:$8 sps:$4 sm:$0xff]  }
 0x254   : > { %4349 = vmatprep.subr.bf16.mxu1 %v5389_v0 }
 0x257   : > { %4350 = vmatpush3.bf16.msra.mxu1 %v4658_v38  ;;  %v4693_v38 = vld [vmem:[#allocation7 + $0xa0] ss:$8 sps:$4 sm:$0xff]  }
 0x258   : > { %4351 = vmatprep.subr.bf16.mxu1 %v5389_v0 }
 0x25b   : > { %4352 = vmatpush3.bf16.msra.mxu1 %v4659_v39  ;;  %v4698_v39 = vld [vmem:[#allocation7 + $0xb4] ss:$8 sps:$4 sm:$0xff]  }
 0x25c   : > { %4353 = vmatprep.subr.bf16.mxu1 %v5389_v0 }
 0x25f   : > { %4354 = vmatpush3.bf16.msra.mxu1 %v4660_v40  ;;  %v4696_v40 = vld [vmem:[#allocation7 + $0xb0] ss:$8 sps:$4 sm:$0xff]  }
 0x260   : > { %4365 = vmatprep.subr.bf16.mxu1 %v5389_v0 }
 0x262   : > { %4356 = vmatmul.mubr.bf16.vlgmr.msra.gmra.mrb[4].mxu1 %v1057_v41  ;;  %v4701_v41 = vld [vmem:[#allocation7 + $0xc4] ss:$8 sps:$4 sm:$0xff]  }
 0x263   : > { %4367 = vmatprep.mubr.msk.bf16.mxu1 %vm5390_vm0, %v5389_v0  ;;  %4366 = vmatpush3.bf16.msra.mxu1 %v4662_v5  ;;  %v5941_v5 = vsub.s32 1, %v5870_v46 }
 0x264   : > { %1603 = vmatprep.subr.bf16.mxu1 %v4689_v31  ;;  %v4726_v31 = vld [vmem:[#allocation8 + $0x50] ss:$8 sps:$4 sm:$0xff]  }
 0x265   : > { %v1498_v7 = vrot.slane %v5875_v50, %v5941_v5 }
 0x315   : > { %v1140_v42 = vpop.f32.mrb[0].mxu1 }
 0x316   : > { %v4337_v43 = vpop.f32.mrb[1].mxu1  ;;  %v1235_v44 = vsel %vm1234_vm1, %v1140_v42, -inf }
 0x317   : > { %1236 = vmax.xlane.f32.xlu0 %v1235_v44  ;;  %v1143_v45 = vpop.f32.mrb[2].mxu1  ;;  %v4704_v43 = vld [vmem:[#allocation7 + $0xd4] ss:$8 sps:$4 sm:$0xff]   ;;  %v4702_v44 = vld [vmem:[#allocation7 + $0xd0] ss:$8 sps:$4 sm:$0xff]  }
 0x318   : > { %v4338_v47 = vpop.f32.mrb[3].mxu1  ;;  %v4707_v45 = vld [vmem:[#allocation7 + $0xe4] ss:$8 sps:$4 sm:$0xff]  }
 0x319   : > { %v4705_v47 = vld [vmem:[#allocation7 + $0xe0] ss:$8 sps:$4 sm:$0xff]  }
 0x335   : > { %v1228_v48 = vpop.f32.mrb[4].mxu1 }
 0x336   : > { %v4357_v51 = vpop.f32.mrb[5].mxu1  ;;  %v1238_v53 = vsel %vm1234_vm1, %v1228_v48, -inf }
 0x337   : > { %1239 = vmax.xlane.f32.xlu0 %v1238_v53  ;;  %v1231_v54 = vpop.f32.mrb[6].mxu1  ;;  %v4708_v51 = vld [vmem:[#allocation7 + $0xf0] ss:$8 sps:$4 sm:$0xff]  }
 0x338   : > { %v4358_v55 = vpop.f32.mrb[7].mxu1 }
 0x3a4   : > { %v1237_v56 = vpop.xlane.xlu0 %1236 }
 0x3a5   : > { %v1241_v58 = vsub.f32 %v1140_v42, %v1237_v56  ;;  %v4699_v42 = vld [vmem:[#allocation7 + $0xc0] ss:$8 sps:$4 sm:$0xff]  }
 0x3a7   : > { %v1243_v59 = vmul.f32 1.442695, %v1241_v58 }
 0x3a9   : > { %5017 = vpow2.f32 %v1243_v59 }
 0x3b3   : > { %v5018_v60 = vpop.eup %5017 }
 0x3b4   : > { %v1247_v61 = vsel %vm1234_vm1, %v5018_v60, 0.0 }
 0x3b5   : > { %1248 = vadd.xlane.f32.xlu1 %v1247_v61 }
 0x3c4   : > { %v1240_v62 = vpop.xlane.xlu0 %1239 }
 0x3c5   : > { %v1242_v63 = vsub.f32 %v1228_v48, %v1240_v62  ;;  %v4710_v48 = vld [vmem:[#allocation7 + $0xf4] ss:$8 sps:$4 sm:$0xff]  }
 0x3c7   : > { %v1245_v1 = vmul.f32 1.442695, %v1242_v63 }
 0x3c9   : > { %5019 = vpow2.f32 %v1245_v1 }
 0x3d3   : > { %v5020_v3 = vpop.eup %5019 }
 0x3d4   : > { %v1250_v4 = vsel %vm1234_vm1, %v5020_v3, 0.0 }
 0x3d5   : > { %1251 = vadd.xlane.f32.xlu1 %v1250_v4 }
 0x442   : > { %v1249_v8 = vpop.xlane.xlu1 %1248 }
 0x443   : > { %5021 = vrcp.f32 %v1249_v8  ;;  %v1502_v8 = vrot.slane %v5877_v52, %v5941_v5 }
 0x44d   : > { %v5022_v9 = vpop.eup %5021 }
 0x44e   : > { %v1255_v10 = vmul.f32 %v5022_v9, %v5018_v60 }
 0x450   : > { %v1257_v12 = vpack.c.bf16 %v1255_v10, %v1255_v10 }
 0x452   : > { %4362 = vmatmul.mubr.msk.bf16.vlgmr.msra.gmra.mrb[4].mxu0 %vm1234_vm1, %v1257_v12 }
 0x453   : > { %1455 = vmatpush1.bf16.msra.mxu0 %v4663_v11  ;;  %1486 = vmatprep.mubr.bf16.mxu0 %v5393_v33 }
 0x454   : > { %1456 = vmatprep.subr.bf16.mxu0 %v4668_v13 }
 0x457   : > { %1457 = vmatpush1.bf16.msra.mxu0 %v4666_v14 }
 0x458   : > { %1458 = vmatprep.subr.bf16.mxu0 %v4671_v15 }
 0x45b   : > { %1459 = vmatpush1.bf16.msra.mxu0 %v4669_v16 }
 0x45c   : > { %1460 = vmatprep.subr.bf16.mxu0 %v4674_v17 }
 0x45f   : > { %1461 = vmatpush1.bf16.msra.mxu0 %v4672_v18  ;;  %v5039_v18 = vld [vmem:[%s5827_s23 + $0x8] sm:$0xff]  ;;  %s6431_s23 = scalar_lea.vmem [#allocation2], %s5796_s7 }
 0x460   : > { %1462 = vmatprep.subr.bf16.mxu0 %v4677_v19  ;;  %s6432_s13 = smov %s6431_s23 }
 0x462   : > { %v1252_v22 = vpop.xlane.xlu1 %1251 }
 0x463   : > { %5023 = vrcp.f32 %v1252_v22  ;;  %1463 = vmatpush1.bf16.msra.mxu0 %v4675_v20  ;;  %v4713_v22 = vld [vmem:[#allocation8 + $0x4] ss:$8 sps:$4 sm:$0xff]  }
 0x464   : > { %1464 = vmatprep.subr.bf16.mxu0 %v4680_v21  ;;  %v4711_v21 = vld [vmem:[#allocation8] ss:$8 sps:$4 sm:$0xff]  }
 0x467   : > { %1465 = vmatpush1.bf16.msra.mxu0 %v4678_v23  ;;  %v4716_v23 = vld [vmem:[#allocation8 + $0x14] ss:$8 sps:$4 sm:$0xff]  }
 0x468   : > { %1466 = vmatprep.subr.bf16.mxu0 %v4683_v24  ;;  %v4714_v24 = vld [vmem:[#allocation8 + $0x10] ss:$8 sps:$4 sm:$0xff]  }
 0x46b   : > { %1467 = vmatpush1.bf16.msra.mxu0 %v4681_v25  ;;  %v4719_v25 = vld [vmem:[#allocation8 + $0x24] ss:$8 sps:$4 sm:$0xff]  }
 0x46c   : > { %1468 = vmatprep.subr.bf16.mxu0 %v4686_v26  ;;  %v4717_v26 = vld [vmem:[#allocation8 + $0x20] ss:$8 sps:$4 sm:$0xff]  }
 0x46d   : > { %v5024_v28 = vpop.eup %5023 }
 0x46e   : > { %v1256_v29 = vmul.f32 %v5024_v28, %v5020_v3  ;;  %v4720_v28 = vld [vmem:[#allocation8 + $0x30] ss:$8 sps:$4 sm:$0xff]  }
 0x46f   : > { %1469 = vmatpush1.bf16.msra.mxu0 %v4684_v27  ;;  %v4722_v27 = vld [vmem:[#allocation8 + $0x34] ss:$8 sps:$4 sm:$0xff]  }
 0x470   : > { %v1258_v30 = vpack.c.bf16 %v1256_v29, %v1256_v29  ;;  %1923 = vmatprep.subr.bf16.mxu0 %v4713_v22  ;;  %v4723_v29 = vld [vmem:[#allocation8 + $0x40] ss:$8 sps:$4 sm:$0xff]  }
 0x472   : > { %4368 = vmatmul.mubr.msk.bf16.vlgmr.msra.gmra.mrb[8].mxu1 %vm1234_vm1, %v1258_v30  ;;  %v4728_v30 = vld [vmem:[#allocation8 + $0x54] ss:$8 sps:$4 sm:$0xff]  }
 0x473   : > { %1604 = vmatpush1.bf16.msra.mxu1 %v4687_v32  ;;  %1635 = vmatprep.mubr.bf16.mxu1 %v5393_v33  ;;  %v4731_v32 = vld [vmem:[#allocation8 + $0x64] ss:$8 sps:$4 sm:$0xff]  }
 0x474   : > { %1605 = vmatprep.subr.bf16.mxu1 %v4692_v34  ;;  %v4729_v34 = vld [vmem:[#allocation8 + $0x60] ss:$8 sps:$4 sm:$0xff]  }
 0x477   : > { %1606 = vmatpush1.bf16.msra.mxu1 %v4690_v35  ;;  %v4734_v35 = vld [vmem:[#allocation8 + $0x74] ss:$8 sps:$4 sm:$0xff]  }
 0x478   : > { %1607 = vmatprep.subr.bf16.mxu1 %v4695_v36  ;;  %v4732_v36 = vld [vmem:[#allocation8 + $0x70] ss:$8 sps:$4 sm:$0xff]  }
 0x47b   : > { %1608 = vmatpush1.bf16.msra.mxu1 %v4693_v38  ;;  %v4737_v38 = vld [vmem:[#allocation8 + $0x84] ss:$8 sps:$4 sm:$0xff]  }
 0x47c   : > { %1609 = vmatprep.subr.bf16.mxu1 %v4698_v39  ;;  %v4735_v39 = vld [vmem:[#allocation8 + $0x80] ss:$8 sps:$4 sm:$0xff]  }
 0x47f   : > { %1610 = vmatpush1.bf16.msra.mxu1 %v4696_v40  ;;  %v4740_v40 = vld [vmem:[#allocation8 + $0x94] ss:$8 sps:$4 sm:$0xff]  }
 0x480   : > { %1611 = vmatprep.subr.bf16.mxu1 %v4701_v41  ;;  %v4738_v41 = vld [vmem:[#allocation8 + $0x90] ss:$8 sps:$4 sm:$0xff]  }
 0x483   : > { %1612 = vmatpush1.bf16.msra.mxu1 %v4699_v42 }
 0x484   : > { %1613 = vmatprep.subr.bf16.mxu1 %v4704_v43 }
 0x487   : > { %1614 = vmatpush1.bf16.msra.mxu1 %v4702_v44 }
 0x488   : > { %1615 = vmatprep.subr.bf16.mxu1 %v4707_v45 }
 0x48b   : > { %1616 = vmatpush1.bf16.msra.mxu1 %v4705_v47 }
 0x48c   : > { %1617 = vmatprep.subr.bf16.mxu1 %v4710_v48 }
 0x48f   : > { %1618 = vmatpush1.bf16.msra.mxu1 %v4708_v51 }
 0x490   : > { %4371 = vmatprep.subr.bf16.mxu1 %v5389_v0 }
 0x525   : > { %v1302_v53 = vpop.f32.mrb[4].mxu0 }
 0x526   : > { %v1357_v54 = vpack.c.bf16 %v1302_v53, %v1302_v53  ;;  %v4363_v55 = vpop.f32.mrb[5].mxu0  ;;  %v4743_v53 = vld [vmem:[#allocation8 + $0xa4] ss:$8 sps:$4 sm:$0xff]  }
 0x527   : > { %v1305_v56 = vpop.f32.mrb[6].mxu0  ;;  %v4746_v55 = vld [vmem:[#allocation8 + $0xb4] ss:$8 sps:$4 sm:$0xff]  }
 0x528   : > { %v4364_v58 = vpop.f32.mrb[7].mxu0  ;;  %1487 = vmatmul.mubr.bf16.vlgmr.msra.gmra.mrb[8].mxu0 %v1357_v54  ;;  %v4741_v54 = vld [vmem:[#allocation8 + $0xa0] ss:$8 sps:$4 sm:$0xff]   ;;  %v4744_v56 = vld [vmem:[#allocation8 + $0xb0] ss:$8 sps:$4 sm:$0xff]  }
 0x529   : > { %1924 = vmatpush1.bf16.msra.mxu0 %v4711_v21  ;;  %v4749_v58 = vld [vmem:[#allocation8 + $0xc4] ss:$8 sps:$4 sm:$0xff]  }
 0x52a   : > { %1925 = vmatprep.subr.bf16.mxu0 %v4716_v23 }
 0x52d   : > { %1926 = vmatpush1.bf16.msra.mxu0 %v4714_v24 }
 0x52e   : > { %1927 = vmatprep.subr.bf16.mxu0 %v4719_v25  ;;  %v4761_v25 = vld [vmem:[%s5846_s28 + $0x10] sm:$0xff]  }
 0x531   : > { %1928 = vmatpush1.bf16.msra.mxu0 %v4717_v26  ;;  %v4762_v26 = vld [vmem:[%s5846_s28 + $0x18] sm:$0xff]  }
 0x532   : > { %1929 = vmatprep.subr.bf16.mxu0 %v4722_v27  ;;  %v4763_v27 = vld [vmem:[%s5846_s28 + $0x20] sm:$0xff]  }
 0x535   : > { %1930 = vmatpush1.bf16.msra.mxu0 %v4720_v28  ;;  %v4764_v28 = vld [vmem:[%s5846_s28 + $0x28] sm:$0xff]  }
 0x545   : > { %v1351_v59 = vpop.f32.mrb[8].mxu1 }
 0x546   : > { %v1505_v60 = vpack.c.bf16 %v1351_v59, %v1351_v59  ;;  %v4369_v61 = vpop.f32.mrb[9].mxu1  ;;  %v4747_v59 = vld [vmem:[#allocation8 + $0xc0] ss:$8 sps:$4 sm:$0xff]  }
 0x547   : > { %v1354_v62 = vpop.f32.mrb[10].mxu1  ;;  %v4750_v61 = vld [vmem:[#allocation8 + $0xd0] ss:$8 sps:$4 sm:$0xff]  }
 0x548   : > { %v4370_v63 = vpop.f32.mrb[11].mxu1  ;;  %1636 = vmatmul.mubr.bf16.vlgmr.msra.gmra.mrb[12].mxu1 %v1505_v60  ;;  %v4752_v60 = vld [vmem:[#allocation8 + $0xd4] ss:$8 sps:$4 sm:$0xff]   ;;  %v4755_v62 = vld [vmem:[#allocation8 + $0xe4] ss:$8 sps:$4 sm:$0xff]  }
 0x549   : > { %4387 = vmatprep.mubr.msk.bf16.mxu1 %vm5390_vm0, %v5389_v0  ;;  %v4753_v63 = vld [vmem:[#allocation8 + $0xe0] ss:$8 sps:$4 sm:$0xff]  }
 0x5fb   : > { %v1488_v1 = vpop.f32.mrb[8].mxu0 }
 0x5fc   : > { %v1490_v2 = vpop.f32.mrb[9].mxu0  ;;  %v1503_v9 = vadd.f32 %v1498_v7, %v1488_v1  ;;  %v4758_v1 = vld [vmem:[#allocation8 + $0xf4] ss:$8 sps:$4 sm:$0xff]  }
 0x5fd   : > { %v1492_v3 = vpop.f32.mrb[10].mxu0  ;;  %v1504_v10 = vadd.f32 %v1502_v8, %v1490_v2  ;;  %v4756_v2 = vld [vmem:[#allocation8 + $0xf0] ss:$8 sps:$4 sm:$0xff]  }
 0x5fe   : > { %v1493_v4 = vpop.f32.mrb[11].mxu0  ;;  %v4759_v3 = vld [vmem:[%s5846_s28] sm:$0xff]  }
 0x5ff   : > { %4372 = vmatpush3.bf16.msra.mxu1 %v4759_v3  ;;  %v4760_v4 = vld [vmem:[%s5846_s28 + $0x8] sm:$0xff]  }
 0x600   : > { %4373 = vmatprep.subr.bf16.mxu1 %v5389_v0 }
 0x603   : > { %4374 = vmatpush3.bf16.msra.mxu1 %v4760_v4 }
 0x604   : > { %4375 = vmatprep.subr.bf16.mxu1 %v5389_v0 }
 0x607   : > { %4376 = vmatpush3.bf16.msra.mxu1 %v4761_v25 }
 0x608   : > { %4377 = vmatprep.subr.bf16.mxu1 %v5389_v0 }
 0x60b   : > { %4378 = vmatpush3.bf16.msra.mxu1 %v4762_v26 }
 0x60c   : > { %4379 = vmatprep.subr.bf16.mxu1 %v5389_v0 }
 0x60f   : > { %4380 = vmatpush3.bf16.msra.mxu1 %v4763_v27 }
 0x610   : > { %4381 = vmatprep.subr.bf16.mxu1 %v5389_v0 }
 0x613   : > { %4382 = vmatpush3.bf16.msra.mxu1 %v4764_v28 }
 0x614   : > { %4383 = vmatprep.subr.bf16.mxu1 %v5389_v0 }
 0x61b   : > { %v1637_v11 = vpop.f32.mrb[12].mxu1 }
 0x61c   : > { %v1644_v12 = vadd.f32 %v1637_v11, %v1503_v9  ;;  %v1639_v13 = vpop.f32.mrb[13].mxu1  ;;  %v1677_v11 = vsub.s32 5, %v5870_v46 }
 0x61d   : > { %v1645_v14 = vadd.f32 %v1639_v13, %v1504_v10  ;;  %v1641_v15 = vpop.f32.mrb[14].mxu1  ;;  %v1667_v10 = vsub.s32 4, %v5870_v46 }
 0x61e   : > { %v1646_v16 = vadd.f32 %v1644_v12, %v5849_v37  ;;  %v1642_v17 = vpop.f32.mrb[15].mxu1  ;;  %v4725_v37 = vld [vmem:[#allocation8 + $0x44] ss:$8 sps:$4 sm:$0xff]  }
 0x61f   : > { %v1647_v19 = vadd.f32 %v5039_v18, %v1645_v14  ;;  %1931 = vmatprep.subr.bf16.mxu0 %v4725_v37  ;;  %v1672_v12 = vrot.slane %v5877_v52, %v1667_v10  ;;  %v1668_v13 = vrot.slane %v5875_v50, %v1667_v10  ;;  %v1682_v17 = vrot.slane %v5877_v52, %v1677_v11  ;;  %v4765_v37 = vld [vmem:[%s5846_s28 + $0x30] sm:$0xff]  }
 0x620   : > { %1932 = vmatpush1.bf16.msra.mxu0 %v4723_v29  ;;  %v1678_v18 = vrot.slane %v5875_v50, %v1677_v11  ;;  %4384 = vmatpush3.bf16.msra.mxu1 %v4765_v37  ;;  %v4766_v29 = vld [vmem:[%s5846_s28 + $0x38] sm:$0xff]   ;;  %v4767_v11 = vld [vmem:[%s5846_s28 + $0x40] sm:$0xff]  }
 0x621   : > { %v1648_v20 = vadd.f32 %v1647_v19, %v1646_v16  ;;  %1933 = vmatprep.subr.bf16.mxu0 %v4728_v30  ;;  %4385 = vmatprep.subr.bf16.mxu1 %v5389_v0  ;;  %v5983_v30 = vsub.s32 2, %v5870_v46 }
 0x623   : > { %1649 = vadd.xlane.f32.xlu0 %v1648_v20 }
 0x624   : > { %1934 = vmatpush1.bf16.msra.mxu0 %v4726_v31  ;;  %4386 = vmatpush3.bf16.msra.mxu1 %v4766_v29  ;;  %v1758_v31 = vrot.slane %v5875_v50, %v5983_v30 }
 0x625   : > { %1935 = vmatprep.subr.bf16.mxu0 %v4731_v32  ;;  %4391 = vmatprep.subr.bf16.mxu1 %v5389_v0  ;;  %v1762_v32 = vrot.slane %v5877_v52, %v5983_v30 }
 0x628   : > { %1936 = vmatpush1.bf16.msra.mxu0 %v4729_v34 }
 0x629   : > { %1937 = vmatprep.subr.bf16.mxu0 %v4734_v35 }
 0x62c   : > { %1938 = vmatpush1.bf16.msra.mxu0 %v4732_v36 }
 0x62d   : > { %1939 = vmatprep.subr.bf16.mxu0 %v4737_v38 }
 0x630   : > { %1940 = vmatpush1.bf16.msra.mxu0 %v4735_v39 }
 0x631   : > { %1941 = vmatprep.subr.bf16.mxu0 %v4740_v40 }
 0x634   : > { %1942 = vmatpush1.bf16.msra.mxu0 %v4738_v41 }
 0x635   : > { %1943 = vmatprep.subr.bf16.mxu0 %v4743_v53 }
 0x638   : > { %1944 = vmatpush1.bf16.msra.mxu0 %v4741_v54 }
 0x639   : > { %1945 = vmatprep.subr.bf16.mxu0 %v4746_v55 }
 0x63c   : > { %1946 = vmatpush1.bf16.msra.mxu0 %v4744_v56 }
 0x63d   : > { %1947 = vmatprep.subr.bf16.mxu0 %v4749_v58 }
 0x640   : > { %1948 = vmatpush1.bf16.msra.mxu0 %v4747_v59 }
 0x641   : > { %1949 = vmatprep.subr.bf16.mxu0 %v4752_v60 }
 0x644   : > { %1950 = vmatpush1.bf16.msra.mxu0 %v4750_v61 }
 0x645   : > { %1951 = vmatprep.subr.bf16.mxu0 %v4755_v62 }
 0x648   : > { %1952 = vmatpush1.bf16.msra.mxu0 %v4753_v63 }
 0x649   : > { %1953 = vmatprep.subr.bf16.mxu0 %v4758_v1 }
 0x64c   : > { %1954 = vmatpush1.bf16.msra.mxu0 %v4756_v2 }
 0x64d   : > { %4411 = vmatprep.subr.bf16.mxu0 %v5389_v0 }
 0x6b0   : > { %v1650_v42 = vpop.xlane.xlu0 %1649 }
 0x6b1   : > { %v1652_v43 = vmul.f32 0.00390625, %v1650_v42 }
 0x6b3   : > { %v1653_v44 = vsub.f32 %v1646_v16, %v1652_v43  ;;  %v1654_v45 = vsub.f32 %v1647_v19, %v1652_v43 }
 0x6b5   : > { %v1655_v47 = vmul.f32 %v1653_v44, %v1653_v44  ;;  %v1656_v48 = vmul.f32 %v1654_v45, %v1654_v45 }
 0x6b7   : > { %v1657_v51 = vadd.f32 %v1656_v48, %v1655_v47 }
 0x6b9   : > { %1658 = vadd.xlane.f32.xlu1 %v1657_v51 }
 0x746   : > { %v1659_v7 = vpop.xlane.xlu1 %1658 }
 0x747   : > { %v1660_v8 = vmul.f32 0.00390625, %v1659_v7 }
 0x749   : > { %v1661_v9 = vadd.f32 1e-05, %v1660_v8 }
 0x74b   : > { %5025 = vrsqrt.f32 %v1661_v9 }
 0x755   : > { %v5026_v14 = vpop.eup %5025 }
 0x756   : > { %v1663_v15 = vmul.f32 %v5026_v14, %v1653_v44  ;;  %v1664_v16 = vmul.f32 %v5026_v14, %v1654_v45  ;;  %v4771_v14 = vld [vmem:[%s5846_s28 + $0x60] sm:$0xff]  }
 0x758   : > { %v1674_v19 = vmul.f32 %v1672_v12, %v1664_v16  ;;  %v1673_v20 = vmul.f32 %v1668_v13, %v1663_v15  ;;  %v4768_v13 = vld [vmem:[%s5846_s28 + $0x48] sm:$0xff]   ;;  %v4773_v16 = vld [vmem:[%s5846_s28 + $0x70] sm:$0xff]  }
 0x759   : > { %v4772_v15 = vld [vmem:[%s5846_s28 + $0x68] sm:$0xff]  }
 0x75a   : > { %v5960_v21 = vadd.f32 %v1682_v17, %v1674_v19  ;;  %v5962_v22 = vadd.f32 %v1678_v18, %v1673_v20  ;;  %v4774_v17 = vld [vmem:[%s5846_s28 + $0x78] sm:$0xff]  }
 0x75c   : > { %v1722_v23 = vpack.c.bf16 %v5960_v21, %v5960_v21  ;;  %v1721_v24 = vpack.c.bf16 %v5962_v22, %v5962_v22 }
 0x75e   : > { %1955 = vmatprep.mubr.bf16.mxu0 %v1722_v23 }
 0x75f   : > { %1956 = vmatmul.mubr.bf16.vlgmr.msra.gmra.mrb[12].mxu0 %v1721_v24 }
 0x760   : > { %4413 = vmatprep.mubr.msk.bf16.mxu0 %vm5390_vm0, %v5389_v0 }
 0x832   : > { %v1957_v34 = vpop.f32.mrb[12].mxu0 }
 0x833   : > { %v1958_v35 = vadd.f32 %v1957_v34, %v1758_v31  ;;  %v1959_v36 = vpop.f32.mrb[13].mxu0 }
 0x834   : > { %v1960_v38 = vadd.f32 %v1959_v36, %v1762_v32  ;;  %v1961_v39 = vpop.f32.mrb[14].mxu0 }
 0x835   : > { %v1964_v40 = vcombine.high %v1958_v35, %v5389_v0  ;;  %v1971_v41 = vrot.slane %v1958_v35, %v5884_v57  ;;  %v1962_v42 = vpop.f32.mrb[15].mxu0 }
 0x836   : > { %v1979_v43 = vcombine.high %v1960_v38, %v5389_v0  ;;  %v1986_v44 = vrot.slane %v1960_v38, %v5884_v57 }
 0x837   : > { %v1978_v45 = vrot.slane %v1964_v40, %v5884_v57  ;;  %v4775_v40 = vld [vmem:[%s6431_s23] sm:$0xff]  }
 0x838   : > { %v1993_v50 = vrot.slane %v1979_v43, %v5884_v57  ;;  %v1994_v47 = vcombine.low %v1971_v41, %v1986_v44  ;;  %v1995_v52 = vcombine.high %v1971_v41, %v1986_v44  ;;  %4412 = vmatpush3.bf16.msra.mxu0 %v4775_v40  ;;  %v4776_v43 = vld [vmem:[%s6432_s13 + $0x8] sm:$0xff]   ;;  %v6038_v40 = vsub.s32 3, %v5870_v46  ;;  %s6435_s13 = sld [smem:[#allocation38_spill]] }
 0x839   : > { %v4779_v44 = vld [vmem:[#allocation10 + $0x4] ss:$8 sps:$4 sm:$0xff]  }
 0x83a   : > { %v2002_v48 = vrot.slane %v1994_v47, %v5891_v6  ;;  %v2009_v51 = vrot.slane %v1995_v52, %v5891_v6  ;;  %v2010_v53 = vcombine.low %v1978_v45, %v1993_v50  ;;  %v2011_v54 = vcombine.high %v1978_v45, %v1993_v50  ;;  %2477 = vmatprep.subr.bf16.mxu0 %v4779_v44  ;;  %v4777_v52 = vld [vmem:[#allocation10] ss:$8 sps:$4 sm:$0xff]  }
 0x83c   : > { %v2018_v55 = vrot.slane %v2010_v53, %v5891_v6  ;;  %v2025_v56 = vrot.slane %v2011_v54, %v5891_v6  ;;  %v2030_v58 = vcombine.low %v2002_v48, %v2009_v51  ;;  %v4083_v59 = vcombine.high %v2002_v48, %v2009_v51  ;;  %v4782_v51 = vld [vmem:[#allocation10 + $0x14] ss:$8 sps:$4 sm:$0xff]   ;;  %v4780_v53 = vld [vmem:[#allocation10 + $0x10] ss:$8 sps:$4 sm:$0xff]   ;;  %v4785_v54 = vld [vmem:[#allocation10 + $0x24] ss:$8 sps:$4 sm:$0xff]  }
 0x83e   : > { %v2037_v60 = vrot.slane %v2030_v58, %v5884_v57  ;;  %v2045_v61 = vrot.slane %v4083_v59, %v5884_v57  ;;  %v2046_v62 = vcombine.low %v2018_v55, %v2025_v56  ;;  %v4084_v63 = vcombine.high %v2018_v55, %v2025_v56  ;;  %v4783_v55 = vld [vmem:[#allocation10 + $0x20] ss:$8 sps:$4 sm:$0xff]   ;;  %v4788_v56 = vld [vmem:[#allocation10 + $0x34] ss:$8 sps:$4 sm:$0xff]   ;;  %v4786_v58 = vld [vmem:[#allocation10 + $0x30] ss:$8 sps:$4 sm:$0xff]   ;;  %s6295_s7 = scalar_lea.hbm %s6435_s13, %s4268_s25 }
 0x83f   : > { %v4791_v59 = vld [vmem:[#allocation10 + $0x44] ss:$8 sps:$4 sm:$0xff]  }
 0x840   : > { %v2053_v1 = vrot.slane %v2046_v62, %v5884_v57  ;;  %v2061_v2 = vrot.slane %v4084_v63, %v5884_v57  ;;  %v2062_v3 = vcombine.low %v2037_v60, %v2045_v61  ;;  %v4769_v57 = vld [vmem:[%s5846_s28 + $0x50] sm:$0xff]   ;;  %v4789_v60 = vld [vmem:[#allocation10 + $0x40] ss:$8 sps:$4 sm:$0xff]  }
 0x841   : > { %v4794_v61 = vld [vmem:[#allocation10 + $0x54] ss:$8 sps:$4 sm:$0xff]   ;;  %v4792_v63 = vld [vmem:[#allocation10 + $0x50] ss:$8 sps:$4 sm:$0xff]  }
 0x842   : > { %v2070_v4 = vcombine.low %v2053_v1, %v2061_v2  ;;  %v2069_v7 = vrot.slane %v2062_v3, %v5891_v6  ;;  %v4797_v1 = vld [vmem:[#allocation10 + $0x64] ss:$8 sps:$4 sm:$0xff]   ;;  %v4795_v2 = vld [vmem:[#allocation10 + $0x60] ss:$8 sps:$4 sm:$0xff]   ;;  %v4800_v3 = vld [vmem:[#allocation10 + $0x74] ss:$8 sps:$4 sm:$0xff]  }
 0x844   : > { %v2077_v8 = vrot.slane %v2070_v4, %v5891_v6  ;;  %v4770_v6 = vld [vmem:[%s5846_s28 + $0x58] sm:$0xff]   ;;  %s3955_s28 = sshll.u32 %s627_s2, 4 }
 0x845   : > { %v4798_v4 = vld [vmem:[#allocation10 + $0x70] ss:$8 sps:$4 sm:$0xff]   ;;  %s629_s0 = scalar_lea.vmem [#allocation14], %s3955_s28 }
 0x846   : > { %v2078_v9 = vcombine.low %v2069_v7, %v2077_v8  ;;  %v2079_v10 = vcombine.high %v2069_v7, %v2077_v8  ;;  %s3736_s23 = sshll.u32 %s629_s0, 4  ;;  %s6297_s23 = int_to_ptr.vmem [resolvable:$true] %s3736_s23 }
 0x847   : > { %s5240_s20 = scalar_lea.vmem %s6297_s23, 256 }
 0x848   : > { %v2080_v12 = vpack.c.bf16 %v2078_v9, %v2078_v9  ;;  %v2081_v18 = vpack.c.bf16 %v2079_v10, %v2079_v10  ;;  %v4803_v10 = vld [vmem:[#allocation10 + $0x84] ss:$8 sps:$4 sm:$0xff]   ;;  %p5241_p6 = scmp.ne.s32.totalorder %s6297_s23, %s5240_s20 }
 0x84a   : > { %4388 = vmatmul.mubr.bf16.vlgmr.msra.gmra.mrb[16].mxu1 %v2080_v12  ;;  %v4806_v12 = vld [vmem:[#allocation10 + $0x94] ss:$8 sps:$4 sm:$0xff]   ;;  %p5242_p11 = pnand %p5241_p6, %p6436_p9 }
 0x84b   : > { %4392 = vmatpush3.bf16.msra.mxu1 %v4767_v11  ;;  %4407 = vmatprep.mubr.msk.bf16.mxu1 %vm5390_vm0, %v5389_v0  ;;  %v4801_v11 = vld [vmem:[#allocation10 + $0x80] ss:$8 sps:$4 sm:$0xff]  }
 0x84c   : > { %4393 = vmatprep.subr.bf16.mxu1 %v5389_v0  ;;  %p5243_p12 = pneg %p5242_p11 }
 0x84f   : > { %4394 = vmatpush3.bf16.msra.mxu1 %v4768_v13  ;;  %v4804_v13 = vld [vmem:[#allocation10 + $0x90] ss:$8 sps:$4 sm:$0xff]  }
 0x850   : > { %4395 = vmatprep.subr.bf16.mxu1 %v5389_v0 }
 0x853   : > { %4396 = vmatpush3.bf16.msra.mxu1 %v4769_v57  ;;  %v4809_v57 = vld [vmem:[#allocation10 + $0xa4] ss:$8 sps:$4 sm:$0xff]  }
 0x854   : > { %4397 = vmatprep.subr.bf16.mxu1 %v5389_v0 }
 0x857   : > { %4398 = vmatpush3.bf16.msra.mxu1 %v4770_v6  ;;  %v4807_v6 = vld [vmem:[#allocation10 + $0xa0] ss:$8 sps:$4 sm:$0xff]  }
 0x858   : > { %4399 = vmatprep.subr.bf16.mxu1 %v5389_v0 }
 0x85b   : > { %4400 = vmatpush3.bf16.msra.mxu1 %v4771_v14  ;;  %v4812_v14 = vld [vmem:[#allocation10 + $0xb4] ss:$8 sps:$4 sm:$0xff]  }
 0x85c   : > { %4401 = vmatprep.subr.bf16.mxu1 %v5389_v0 }
 0x85f   : > { %4402 = vmatpush3.bf16.msra.mxu1 %v4772_v15  ;;  %v4810_v15 = vld [vmem:[#allocation10 + $0xb0] ss:$8 sps:$4 sm:$0xff]  }
 0x860   : > { %4403 = vmatprep.subr.bf16.mxu1 %v5389_v0 }
 0x863   : > { %4404 = vmatpush3.bf16.msra.mxu1 %v4773_v16  ;;  %v4815_v16 = vld [vmem:[#allocation10 + $0xc4] ss:$8 sps:$4 sm:$0xff]  }
 0x864   : > { %4405 = vmatprep.subr.bf16.mxu1 %v5389_v0 }
 0x867   : > { %4406 = vmatpush3.bf16.msra.mxu1 %v4774_v17  ;;  %v4813_v17 = vld [vmem:[#allocation10 + $0xc0] ss:$8 sps:$4 sm:$0xff]  }
 0x868   : > { %4417 = vmatprep.subr.bf16.mxu1 %v5389_v0 }
 0x86a   : > { %4408 = vmatmul.mubr.bf16.vlgmr.msra.gmra.mrb[20].mxu1 %v2081_v18  ;;  %v4816_v18 = vld [vmem:[#allocation10 + $0xd0] ss:$8 sps:$4 sm:$0xff]  }
 0x86b   : > { %4419 = vmatprep.mubr.msk.bf16.mxu1 %vm5390_vm0, %v5389_v0  ;;  %4418 = vmatpush3.bf16.msra.mxu1 %v4776_v43  ;;  %v6044_v43 = vld [vmem:[#allocation13 + $0x8] sm:$0xff] }
 0x86c   : > { %2626 = vmatprep.subr.bf16.mxu1 %v4803_v10  ;;  %v2525_v44 = vrot.slane %v6044_v43, %v6038_v40  ;;  %v4843_v10 = vld [vmem:[%s6433_s4 + $0x60] ss:$16 sps:$4 sm:$0xff]  }
 0x91d   : > { %v2164_v19 = vpop.f32.mrb[16].mxu1 }
 0x91e   : > { %v4389_v20 = vpop.f32.mrb[17].mxu1  ;;  %v2258_v23 = vsel %vm1234_vm1, %v2164_v19, -inf }
 0x91f   : > { %2259 = vmax.xlane.f32.xlu0 %v2258_v23  ;;  %v2167_v24 = vpop.f32.mrb[18].mxu1  ;;  %v4819_v20 = vld [vmem:[#allocation10 + $0xe0] ss:$8 sps:$4 sm:$0xff]   ;;  %v4824_v23 = vld [vmem:[#allocation10 + $0xf4] ss:$8 sps:$4 sm:$0xff]  }
 0x920   : > { %v4390_v25 = vpop.f32.mrb[19].mxu1  ;;  %v4822_v24 = vld [vmem:[#allocation10 + $0xf0] ss:$8 sps:$4 sm:$0xff]  }
 0x93d   : > { %v2252_v26 = vpop.f32.mrb[20].mxu1 }
 0x93e   : > { %v4409_v27 = vpop.f32.mrb[21].mxu1  ;;  %v2261_v28 = vsel %vm1234_vm1, %v2252_v26, -inf }
 0x93f   : > { %2262 = vmax.xlane.f32.xlu1 %v2261_v28  ;;  %v2255_v37 = vpop.f32.mrb[22].mxu1 }
 0x940   : > { %v4410_v29 = vpop.f32.mrb[23].mxu1 }
 0x9ac   : > { %v2260_v31 = vpop.xlane.xlu0 %2259 }
 0x9ad   : > { %v2264_v32 = vsub.f32 %v2164_v19, %v2260_v31  ;;  %v4821_v19 = vld [vmem:[#allocation10 + $0xe4] ss:$8 sps:$4 sm:$0xff]  }
 0x9af   : > { %v2266_v34 = vmul.f32 1.442695, %v2264_v32 }
 0x9b1   : > { %5027 = vpow2.f32 %v2266_v34 }
 0x9bb   : > { %v5028_v0 = vpop.eup %5027 }
 0x9bc   : > { %v2270_v35 = vsel %vm1234_vm1, %v5028_v0, 0.0 }
 0x9bd   : > { %2271 = vadd.xlane.f32.xlu0 %v2270_v35 }
 0x9cc   : > { %v2263_v36 = vpop.xlane.xlu1 %2262 }
 0x9cd   : > { %v2265_v38 = vsub.f32 %v2252_v26, %v2263_v36 }
 0x9cf   : > { %v2268_v39 = vmul.f32 1.442695, %v2265_v38 }
 0x9d1   : > { %5029 = vpow2.f32 %v2268_v39 }
 0x9db   : > { %v5030_v41 = vpop.eup %5029 }
 0x9dc   : > { %v2273_v42 = vsel %vm1234_vm1, %v5030_v41, 0.0 }
 0x9dd   : > { %2274 = vadd.xlane.f32.xlu1 %v2273_v42 }
 0xa4a   : > { %v2272_v45 = vpop.xlane.xlu0 %2271 }
 0xa4b   : > { %5031 = vrcp.f32 %v2272_v45 }
 0xa55   : > { %v5032_v50 = vpop.eup %5031 }
 0xa56   : > { %v2278_v47 = vmul.f32 %v5032_v50, %v5028_v0 }
 0xa58   : > { %v2280_v48 = vpack.c.bf16 %v2278_v47, %v2278_v47 }
 0xa5a   : > { %4414 = vmatmul.mubr.msk.bf16.vlgmr.msra.gmra.mrb[16].mxu0 %vm1234_vm1, %v2280_v48 }
 0xa5b   : > { %2478 = vmatpush1.bf16.msra.mxu0 %v4777_v52  ;;  %2509 = vmatprep.mubr.bf16.mxu0 %v5393_v33 }
 0xa5c   : > { %2479 = vmatprep.subr.bf16.mxu0 %v4782_v51 }
 0xa5f   : > { %2480 = vmatpush1.bf16.msra.mxu0 %v4780_v53 }
 0xa60   : > { %2481 = vmatprep.subr.bf16.mxu0 %v4785_v54 }
 0xa63   : > { %2482 = vmatpush1.bf16.msra.mxu0 %v4783_v55 }
 0xa64   : > { %2483 = vmatprep.subr.bf16.mxu0 %v4788_v56 }
 0xa67   : > { %2484 = vmatpush1.bf16.msra.mxu0 %v4786_v58 }
 0xa68   : > { %2485 = vmatprep.subr.bf16.mxu0 %v4791_v59  ;;  %v4825_v59 = vld [vmem:[%s6433_s4] ss:$16 sps:$4 sm:$0xff]  }
 0xa6a   : > { %v2275_v62 = vpop.xlane.xlu1 %2274 }
 0xa6b   : > { %5033 = vrcp.f32 %v2275_v62  ;;  %2486 = vmatpush1.bf16.msra.mxu0 %v4789_v60  ;;  %v4827_v60 = vld [vmem:[%s6433_s4 + $0x4] ss:$16 sps:$4 sm:$0xff]   ;;  %v4836_v62 = vld [vmem:[%s6433_s4 + $0x2c] ss:$16 sps:$4 sm:$0xff]  }
 0xa6c   : > { %2487 = vmatprep.subr.bf16.mxu0 %v4794_v61  ;;  %v4833_v61 = vld [vmem:[%s6433_s4 + $0x24] ss:$16 sps:$4 sm:$0xff]  }
 0xa6f   : > { %2488 = vmatpush1.bf16.msra.mxu0 %v4792_v63  ;;  %v4831_v63 = vld [vmem:[%s6433_s4 + $0x20] ss:$16 sps:$4 sm:$0xff]  }
 0xa70   : > { %2489 = vmatprep.subr.bf16.mxu0 %v4797_v1  ;;  %v4834_v1 = vld [vmem:[%s6433_s4 + $0x28] ss:$16 sps:$4 sm:$0xff]  }
 0xa73   : > { %2490 = vmatpush1.bf16.msra.mxu0 %v4795_v2  ;;  %v4839_v2 = vld [vmem:[%s6433_s4 + $0x44] ss:$16 sps:$4 sm:$0xff]  }
 0xa74   : > { %2491 = vmatprep.subr.bf16.mxu0 %v4800_v3  ;;  %v4842_v3 = vld [vmem:[%s6433_s4 + $0x4c] ss:$16 sps:$4 sm:$0xff]  }
 0xa75   : > { %v5034_v7 = vpop.eup %5033 }
 0xa76   : > { %v2279_v8 = vmul.f32 %v5034_v7, %v5030_v41  ;;  %v6040_v41 = vld [vmem:[#allocation13] sm:$0xff]  ;;  %v4840_v7 = vld [vmem:[%s6433_s4 + $0x48] ss:$16 sps:$4 sm:$0xff]  }
 0xa77   : > { %2492 = vmatpush1.bf16.msra.mxu0 %v4798_v4  ;;  %v2521_v42 = vrot.slane %v6040_v41, %v6038_v40  ;;  %v4837_v4 = vld [vmem:[%s6433_s4 + $0x40] ss:$16 sps:$4 sm:$0xff]  }
 0xa78   : > { %v2281_v9 = vpack.c.bf16 %v2279_v8, %v2279_v8  ;;  %3115 = vmatprep.subr.bf16.mxu0 %v4827_v60  ;;  %v4845_v8 = vld [vmem:[%s6433_s4 + $0x64] ss:$16 sps:$4 sm:$0xff]   ;;  %v4900_v60 = vld [vmem:[%s6433_s4 + $0x188] ss:$16 sps:$4 sm:$0xff]  }
 0xa7a   : > { %4420 = vmatmul.mubr.msk.bf16.vlgmr.msra.gmra.mrb[24].mxu1 %vm1234_vm1, %v2281_v9  ;;  %v4848_v9 = vld [vmem:[%s6433_s4 + $0x6c] ss:$16 sps:$4 sm:$0xff]  }
 0xa7b   : > { %2658 = vmatprep.mubr.bf16.mxu1 %v5393_v33  ;;  %2627 = vmatpush1.bf16.msra.mxu1 %v4801_v11  ;;  %v4818_v33 = vld [vmem:[#allocation10 + $0xd4] ss:$8 sps:$4 sm:$0xff]   ;;  %v4846_v11 = vld [vmem:[%s6433_s4 + $0x68] ss:$16 sps:$4 sm:$0xff]  }
 0xa7c   : > { %2628 = vmatprep.subr.bf16.mxu1 %v4806_v12  ;;  %v4851_v12 = vld [vmem:[%s6433_s4 + $0x84] ss:$16 sps:$4 sm:$0xff]  }
 0xa7f   : > { %2629 = vmatpush1.bf16.msra.mxu1 %v4804_v13  ;;  %v4854_v13 = vld [vmem:[%s6433_s4 + $0x8c] ss:$16 sps:$4 sm:$0xff]  }
 0xa80   : > { %2630 = vmatprep.subr.bf16.mxu1 %v4809_v57  ;;  %v4849_v57 = vld [vmem:[%s6433_s4 + $0x80] ss:$16 sps:$4 sm:$0xff]  }
 0xa83   : > { %2631 = vmatpush1.bf16.msra.mxu1 %v4807_v6  ;;  %v4852_v6 = vld [vmem:[%s6433_s4 + $0x88] ss:$16 sps:$4 sm:$0xff]  }
 0xa84   : > { %2632 = vmatprep.subr.bf16.mxu1 %v4812_v14  ;;  %v4857_v14 = vld [vmem:[%s6433_s4 + $0xa4] ss:$16 sps:$4 sm:$0xff]  }
 0xa87   : > { %2633 = vmatpush1.bf16.msra.mxu1 %v4810_v15  ;;  %v4860_v15 = vld [vmem:[%s6433_s4 + $0xac] ss:$16 sps:$4 sm:$0xff]  }
 0xa88   : > { %2634 = vmatprep.subr.bf16.mxu1 %v4815_v16  ;;  %v4855_v16 = vld [vmem:[%s6433_s4 + $0xa0] ss:$16 sps:$4 sm:$0xff]  }
 0xa8b   : > { %2635 = vmatpush1.bf16.msra.mxu1 %v4813_v17  ;;  %v4858_v17 = vld [vmem:[%s6433_s4 + $0xa8] ss:$16 sps:$4 sm:$0xff]  }
 0xa8c   : > { %2636 = vmatprep.subr.bf16.mxu1 %v4818_v33  ;;  %v4863_v33 = vld [vmem:[%s6433_s4 + $0xc4] ss:$16 sps:$4 sm:$0xff]  }
 0xa8f   : > { %2637 = vmatpush1.bf16.msra.mxu1 %v4816_v18  ;;  %v4866_v18 = vld [vmem:[%s6433_s4 + $0xcc] ss:$16 sps:$4 sm:$0xff]  }
 0xa90   : > { %2638 = vmatprep.subr.bf16.mxu1 %v4821_v19  ;;  %v4861_v19 = vld [vmem:[%s6433_s4 + $0xc0] ss:$16 sps:$4 sm:$0xff]  }
 0xa93   : > { %2639 = vmatpush1.bf16.msra.mxu1 %v4819_v20  ;;  %v4864_v20 = vld [vmem:[%s6433_s4 + $0xc8] ss:$16 sps:$4 sm:$0xff]  }
 0xa94   : > { %2640 = vmatprep.subr.bf16.mxu1 %v4824_v23  ;;  %v4869_v23 = vld [vmem:[%s6433_s4 + $0xe4] ss:$16 sps:$4 sm:$0xff]  }
 0xa97   : > { %2641 = vmatpush1.bf16.msra.mxu1 %v4822_v24  ;;  %v4872_v24 = vld [vmem:[%s6433_s4 + $0xec] ss:$16 sps:$4 sm:$0xff]  }
 0xb2d   : > { %v2325_v25 = vpop.f32.mrb[16].mxu0 }
 0xb2e   : > { %v2380_v26 = vpack.c.bf16 %v2325_v25, %v2325_v25  ;;  %v4415_v27 = vpop.f32.mrb[17].mxu0  ;;  %v4867_v25 = vld [vmem:[%s6433_s4 + $0xe0] ss:$16 sps:$4 sm:$0xff]  }
 0xb2f   : > { %v2328_v28 = vpop.f32.mrb[18].mxu0  ;;  %v4875_v27 = vld [vmem:[%s6433_s4 + $0x104] ss:$16 sps:$4 sm:$0xff]  }
 0xb30   : > { %v4416_v37 = vpop.f32.mrb[19].mxu0  ;;  %2510 = vmatmul.mubr.bf16.vlgmr.msra.gmra.mrb[20].mxu0 %v2380_v26  ;;  %v4870_v26 = vld [vmem:[%s6433_s4 + $0xe8] ss:$16 sps:$4 sm:$0xff]   ;;  %v4878_v28 = vld [vmem:[%s6433_s4 + $0x10c] ss:$16 sps:$4 sm:$0xff]  }
 0xb31   : > { %3116 = vmatpush1.bf16.msra.mxu0 %v4825_v59  ;;  %v4873_v37 = vld [vmem:[%s6433_s4 + $0x100] ss:$16 sps:$4 sm:$0xff]  }
 0xb32   : > { %3117 = vmatprep.subr.bf16.mxu0 %v4833_v61  ;;  %v4897_v59 = vld [vmem:[%s6433_s4 + $0x180] ss:$16 sps:$4 sm:$0xff]  }
 0xb33   : > { %v4903_v61 = vld [vmem:[%s6433_s4 + $0x1a0] ss:$16 sps:$4 sm:$0xff]  }
 0xb35   : > { %3118 = vmatpush1.bf16.msra.mxu0 %v4831_v63  ;;  %v4911_v63 = vld [vmem:[%s6433_s4 + $0x1c4] ss:$16 sps:$4 sm:$0xff]  }
 0xb36   : > { %3119 = vmatprep.subr.bf16.mxu0 %v4839_v2  ;;  %v4909_v2 = vld [vmem:[%s6433_s4 + $0x1c0] ss:$16 sps:$4 sm:$0xff]  }
 0xb39   : > { %3120 = vmatpush1.bf16.msra.mxu0 %v4837_v4  ;;  %v4917_v4 = vld [vmem:[%s6433_s4 + $0x1e4] ss:$16 sps:$4 sm:$0xff]  }
 0xb3a   : > { %3121 = vmatprep.subr.bf16.mxu0 %v4845_v8  ;;  %v4915_v8 = vld [vmem:[%s6433_s4 + $0x1e0] ss:$16 sps:$4 sm:$0xff]  }
 0xb3d   : > { %3122 = vmatpush1.bf16.msra.mxu0 %v4843_v10  ;;  %v4923_v10 = vld [vmem:[#allocation11 + $0x4] ss:$8 sps:$4 sm:$0xff]  }
 0xb3e   : > { %3123 = vmatprep.subr.bf16.mxu0 %v4851_v12 }
 0xb41   : > { %3124 = vmatpush1.bf16.msra.mxu0 %v4849_v57 }
 0xb42   : > { %3125 = vmatprep.subr.bf16.mxu0 %v4857_v14  ;;  %v2699_v14 = vsub.s32 7, %v5870_v46 }
 0xb45   : > { %3126 = vmatpush1.bf16.msra.mxu0 %v4855_v16 }
 0xb46   : > { %3127 = vmatprep.subr.bf16.mxu0 %v4863_v33 }
 0xb49   : > { %3128 = vmatpush1.bf16.msra.mxu0 %v4861_v19  ;;  %v2704_v19 = vrot.slane %v6044_v43, %v2699_v14 }
 0xb4a   : > { %3129 = vmatprep.subr.bf16.mxu0 %v4869_v23 }
 0xb4d   : > { %v2374_v29 = vpop.f32.mrb[24].mxu1  ;;  %3130 = vmatpush1.bf16.msra.mxu0 %v4867_v25 }
 0xb4e   : > { %v2528_v31 = vpack.c.bf16 %v2374_v29, %v2374_v29  ;;  %v4421_v32 = vpop.f32.mrb[25].mxu1  ;;  %3131 = vmatprep.subr.bf16.mxu0 %v4875_v27  ;;  %v4876_v29 = vld [vmem:[%s6433_s4 + $0x108] ss:$16 sps:$4 sm:$0xff]  }
 0xb4f   : > { %v2377_v34 = vpop.f32.mrb[26].mxu1  ;;  %v4884_v32 = vld [vmem:[%s6433_s4 + $0x12c] ss:$16 sps:$4 sm:$0xff]  }
 0xb50   : > { %v4422_v0 = vpop.f32.mrb[27].mxu1  ;;  %2659 = vmatmul.mubr.bf16.vlgmr.msra.gmra.mrb[28].mxu1 %v2528_v31  ;;  %v4881_v31 = vld [vmem:[%s6433_s4 + $0x124] ss:$16 sps:$4 sm:$0xff]   ;;  %v4879_v34 = vld [vmem:[%s6433_s4 + $0x120] ss:$16 sps:$4 sm:$0xff]  }
 0xb51   : > { %3132 = vmatpush1.bf16.msra.mxu0 %v4873_v37  ;;  %v4882_v0 = vld [vmem:[%s6433_s4 + $0x128] ss:$16 sps:$4 sm:$0xff]  }
 0xb52   : > { %3133 = vmatprep.subr.bf16.mxu0 %v4881_v31  ;;  %v4924_v37 = vld [vmem:[#allocation11 + $0x100] ss:$8 sps:$4 sm:$0xff]   ;;  %v4932_v31 = vld [vmem:[#allocation11 + $0x114] ss:$8 sps:$4 sm:$0xff]  }
 0xb55   : > { %3134 = vmatpush1.bf16.msra.mxu0 %v4879_v34  ;;  %v4938_v34 = vld [vmem:[#allocation11 + $0x124] ss:$8 sps:$4 sm:$0xff]  }
 0xc03   : > { %v2511_v35 = vpop.f32.mrb[20].mxu0 }
 0xc04   : > { %v2513_v36 = vpop.f32.mrb[21].mxu0  ;;  %v2526_v45 = vadd.f32 %v2521_v42, %v2511_v35 }
 0xc05   : > { %v2515_v38 = vpop.f32.mrb[22].mxu0  ;;  %v2527_v50 = vadd.f32 %v2525_v44, %v2513_v36 }
 0xc06   : > { %v2516_v39 = vpop.f32.mrb[23].mxu0 }
 0xc23   : > { %v2660_v47 = vpop.f32.mrb[28].mxu1 }
 0xc24   : > { %v2667_v52 = vadd.f32 %v2660_v47, %v2526_v45  ;;  %v2662_v48 = vpop.f32.mrb[29].mxu1  ;;  %v4890_v47 = vld [vmem:[%s6433_s4 + $0x14c] ss:$16 sps:$4 sm:$0xff]  }
 0xc25   : > { %v2668_v51 = vadd.f32 %v2662_v48, %v2527_v50  ;;  %v2664_v53 = vpop.f32.mrb[30].mxu1  ;;  %v4887_v50 = vld [vmem:[%s6433_s4 + $0x144] ss:$16 sps:$4 sm:$0xff]   ;;  %v4888_v48 = vld [vmem:[%s6433_s4 + $0x148] ss:$16 sps:$4 sm:$0xff]  }
 0xc26   : > { %v6049_v54 = vadd.f32 %v2667_v52, %v5962_v22  ;;  %v2665_v55 = vpop.f32.mrb[31].mxu1  ;;  %v4828_v22 = vld [vmem:[%s6433_s4 + $0x8] ss:$16 sps:$4 sm:$0xff]   ;;  %v4885_v52 = vld [vmem:[%s6433_s4 + $0x140] ss:$16 sps:$4 sm:$0xff]   ;;  %3135 = vmatprep.subr.bf16.mxu0 %v4887_v50 }
 0xc27   : > { %v6052_v56 = vadd.f32 %v2668_v51, %v5960_v21  ;;  %v4830_v21 = vld [vmem:[%s6433_s4 + $0xc] ss:$16 sps:$4 sm:$0xff]   ;;  %3136 = vmatpush1.bf16.msra.mxu0 %v4885_v52  ;;  %v4893_v51 = vld [vmem:[%s6433_s4 + $0x164] ss:$16 sps:$4 sm:$0xff]   ;;  %v4894_v55 = vld [vmem:[%s6433_s4 + $0x168] ss:$16 sps:$4 sm:$0xff]  }
 0xc28   : > { %3156 = vmatprep.subr.bf16.mxu1 %v4830_v21  ;;  %v4896_v53 = vld [vmem:[%s6433_s4 + $0x16c] ss:$16 sps:$4 sm:$0xff]   ;;  %3137 = vmatprep.subr.bf16.mxu0 %v4893_v51  ;;  %v4945_v50 = vld [vmem:[#allocation11 + $0x40] ss:$8 sps:$4 sm:$0xff]   ;;  %v4951_v51 = vld [vmem:[#allocation11 + $0x50] ss:$8 sps:$4 sm:$0xff]  }
 0xc29   : > { %v2671_v58 = vadd.f32 %v6052_v56, %v6049_v54  ;;  %3157 = vmatpush1.bf16.msra.mxu1 %v4828_v22  ;;  %v4905_v22 = vld [vmem:[%s6433_s4 + $0x1a4] ss:$16 sps:$4 sm:$0xff]   ;;  %v4908_v21 = vld [vmem:[%s6433_s4 + $0x1ac] ss:$16 sps:$4 sm:$0xff]  }
 0xc2a   : > { %3158 = vmatprep.subr.bf16.mxu1 %v4836_v62  ;;  %v4906_v62 = vld [vmem:[%s6433_s4 + $0x1a8] ss:$16 sps:$4 sm:$0xff]   ;;  %v4953_v52 = vld [vmem:[#allocation11 + $0x54] ss:$8 sps:$4 sm:$0xff]  }
 0xc2b   : > { %2672 = vadd.xlane.f32.xlu0 %v2671_v58  ;;  %v4902_v58 = vld [vmem:[%s6433_s4 + $0x18c] ss:$16 sps:$4 sm:$0xff]  }
 0xc2d   : > { %3159 = vmatpush1.bf16.msra.mxu1 %v4834_v1  ;;  %v4914_v1 = vld [vmem:[%s6433_s4 + $0x1cc] ss:$16 sps:$4 sm:$0xff]  }
 0xc2e   : > { %3160 = vmatprep.subr.bf16.mxu1 %v4842_v3  ;;  %v4912_v3 = vld [vmem:[%s6433_s4 + $0x1c8] ss:$16 sps:$4 sm:$0xff]  }
 0xc31   : > { %3161 = vmatpush1.bf16.msra.mxu1 %v4840_v7  ;;  %v4920_v7 = vld [vmem:[%s6433_s4 + $0x1ec] ss:$16 sps:$4 sm:$0xff]  }
 0xc32   : > { %3162 = vmatprep.subr.bf16.mxu1 %v4848_v9  ;;  %v4918_v9 = vld [vmem:[%s6433_s4 + $0x1e8] ss:$16 sps:$4 sm:$0xff]  }
 0xc35   : > { %3163 = vmatpush1.bf16.msra.mxu1 %v4846_v11  ;;  %v4926_v11 = vld [vmem:[#allocation11 + $0x104] ss:$8 sps:$4 sm:$0xff]  }
 0xc36   : > { %3164 = vmatprep.subr.bf16.mxu1 %v4854_v13 }
 0xc39   : > { %3165 = vmatpush1.bf16.msra.mxu1 %v4852_v6  ;;  %v2689_v6 = vsub.s32 6, %v5870_v46 }
 0xc3a   : > { %3166 = vmatprep.subr.bf16.mxu1 %v4860_v15 }
 0xc3b   : > { %v2694_v15 = vrot.slane %v6044_v43, %v2689_v6  ;;  %v2690_v16 = vrot.slane %v6040_v41, %v2689_v6  ;;  %v4930_v43 = vld [vmem:[#allocation11 + $0x110] ss:$8 sps:$4 sm:$0xff]  }
 0xc3c   : > { %v4990_v6 = vld [vmem:[#allocation11 + $0x1b0] ss:$8 sps:$4 sm:$0xff]  }
 0xc3d   : > { %3167 = vmatpush1.bf16.msra.mxu1 %v4858_v17 }
 0xc3e   : > { %3168 = vmatprep.subr.bf16.mxu1 %v4866_v18 }
 0xc41   : > { %3169 = vmatpush1.bf16.msra.mxu1 %v4864_v20  ;;  %v2700_v20 = vrot.slane %v6040_v41, %v2699_v14  ;;  %v4927_v41 = vld [vmem:[#allocation11 + $0x10] ss:$8 sps:$4 sm:$0xff]   ;;  %v4995_v14 = vld [vmem:[#allocation11 + $0xc4] ss:$8 sps:$4 sm:$0xff]  }
 0xc42   : > { %3170 = vmatprep.subr.bf16.mxu1 %v4872_v24 }
 0xc45   : > { %3171 = vmatpush1.bf16.msra.mxu1 %v4870_v26 }
 0xc46   : > { %3172 = vmatprep.subr.bf16.mxu1 %v4878_v28  ;;  %v4921_v28 = vld [vmem:[#allocation11] ss:$8 sps:$4 sm:$0xff]  }
 0xc49   : > { %3173 = vmatpush1.bf16.msra.mxu1 %v4876_v29  ;;  %v4929_v29 = vld [vmem:[#allocation11 + $0x14] ss:$8 sps:$4 sm:$0xff]  }
 0xc4a   : > { %3174 = vmatprep.subr.bf16.mxu1 %v4884_v32  ;;  %v4935_v32 = vld [vmem:[#allocation11 + $0x24] ss:$8 sps:$4 sm:$0xff]  }
 0xc4d   : > { %3175 = vmatpush1.bf16.msra.mxu1 %v4882_v0  ;;  %v4933_v0 = vld [vmem:[#allocation11 + $0x20] ss:$8 sps:$4 sm:$0xff]  }
 0xc4e   : > { %3176 = vmatprep.subr.bf16.mxu1 %v4890_v47  ;;  %v4948_v47 = vld [vmem:[#allocation11 + $0x140] ss:$8 sps:$4 sm:$0xff]  }
 0xc51   : > { %3177 = vmatpush1.bf16.msra.mxu1 %v4888_v48  ;;  %v4956_v48 = vld [vmem:[#allocation11 + $0x154] ss:$8 sps:$4 sm:$0xff]  }
 0xc52   : > { %3178 = vmatprep.subr.bf16.mxu1 %v4896_v53  ;;  %v4954_v53 = vld [vmem:[#allocation11 + $0x150] ss:$8 sps:$4 sm:$0xff]  }
 0xc55   : > { %3179 = vmatpush1.bf16.msra.mxu1 %v4894_v55  ;;  %v4962_v55 = vld [vmem:[#allocation11 + $0x164] ss:$8 sps:$4 sm:$0xff]  }
 0xc56   : > { %3180 = vmatprep.subr.bf16.mxu1 %v4902_v58  ;;  %v4960_v58 = vld [vmem:[#allocation11 + $0x160] ss:$8 sps:$4 sm:$0xff]  }
 0xc59   : > { %3181 = vmatpush1.bf16.msra.mxu1 %v4900_v60  ;;  %v4968_v60 = vld [vmem:[#allocation11 + $0x174] ss:$8 sps:$4 sm:$0xff]  }
 0xc5a   : > { %3182 = vmatprep.subr.bf16.mxu1 %v4908_v21  ;;  %v4966_v21 = vld [vmem:[#allocation11 + $0x170] ss:$8 sps:$4 sm:$0xff]  }
 0xc5d   : > { %3183 = vmatpush1.bf16.msra.mxu1 %v4906_v62  ;;  %v4974_v62 = vld [vmem:[#allocation11 + $0x184] ss:$8 sps:$4 sm:$0xff]  }
 0xc5e   : > { %3184 = vmatprep.subr.bf16.mxu1 %v4914_v1  ;;  %v4972_v1 = vld [vmem:[#allocation11 + $0x180] ss:$8 sps:$4 sm:$0xff]  }
 0xc61   : > { %3185 = vmatpush1.bf16.msra.mxu1 %v4912_v3  ;;  %v4980_v3 = vld [vmem:[#allocation11 + $0x194] ss:$8 sps:$4 sm:$0xff]  }
 0xc62   : > { %3186 = vmatprep.subr.bf16.mxu1 %v4920_v7  ;;  %v4978_v7 = vld [vmem:[#allocation11 + $0x190] ss:$8 sps:$4 sm:$0xff]  }
 0xc65   : > { %3187 = vmatpush1.bf16.msra.mxu1 %v4918_v9  ;;  %v4986_v9 = vld [vmem:[#allocation11 + $0x1a4] ss:$8 sps:$4 sm:$0xff]  }
 0xc66   : > { %3638 = vmatprep.subr.bf16.mxu1 %v4926_v11  ;;  %v4984_v11 = vld [vmem:[#allocation11 + $0x1a0] ss:$8 sps:$4 sm:$0xff]  }
 0xcb8   : > { %v2673_v35 = vpop.xlane.xlu0 %2672 }
 0xcb9   : > { %v2674_v36 = vmul.f32 0.00390625, %v2673_v35  ;;  %v4936_v35 = vld [vmem:[#allocation11 + $0x120] ss:$8 sps:$4 sm:$0xff]  }
 0xcbb   : > { %v6177_v38 = vsub.f32 %v6049_v54, %v2674_v36  ;;  %v6180_v39 = vsub.f32 %v6052_v56, %v2674_v36  ;;  %v4891_v54 = vld [vmem:[%s6433_s4 + $0x160] ss:$16 sps:$4 sm:$0xff]   ;;  %v4899_v56 = vld [vmem:[%s6433_s4 + $0x184] ss:$16 sps:$4 sm:$0xff]  }
 0xcbc   : > { %3138 = vmatpush1.bf16.msra.mxu0 %v4891_v54  ;;  %v4941_v36 = vld [vmem:[#allocation11 + $0x34] ss:$8 sps:$4 sm:$0xff]   ;;  %v4959_v54 = vld [vmem:[#allocation11 + $0x64] ss:$8 sps:$4 sm:$0xff]  }
 0xcbd   : > { %v2677_v42 = vmul.f32 %v6177_v38, %v6177_v38  ;;  %v2678_v44 = vmul.f32 %v6180_v39, %v6180_v39  ;;  %3139 = vmatprep.subr.bf16.mxu0 %v4899_v56  ;;  %v4957_v56 = vld [vmem:[#allocation11 + $0x60] ss:$8 sps:$4 sm:$0xff]  }
 0xcbf   : > { %v2679_v45 = vadd.f32 %v2678_v44, %v2677_v42  ;;  %v4942_v42 = vld [vmem:[#allocation11 + $0x130] ss:$8 sps:$4 sm:$0xff]   ;;  %v4947_v44 = vld [vmem:[#allocation11 + $0x44] ss:$8 sps:$4 sm:$0xff]  }
 0xcc0   : > { %3140 = vmatpush1.bf16.msra.mxu0 %v4897_v59  ;;  %v4965_v59 = vld [vmem:[#allocation11 + $0x74] ss:$8 sps:$4 sm:$0xff]  }
 0xcc1   : > { %2680 = vadd.xlane.f32.xlu1 %v2679_v45  ;;  %3141 = vmatprep.subr.bf16.mxu0 %v4905_v22  ;;  %v4950_v45 = vld [vmem:[#allocation11 + $0x144] ss:$8 sps:$4 sm:$0xff]   ;;  %v4963_v22 = vld [vmem:[#allocation11 + $0x70] ss:$8 sps:$4 sm:$0xff]  }
 0xcc4   : > { %3142 = vmatpush1.bf16.msra.mxu0 %v4903_v61  ;;  %v4971_v61 = vld [vmem:[#allocation11 + $0x84] ss:$8 sps:$4 sm:$0xff]  }
 0xcc5   : > { %3143 = vmatprep.subr.bf16.mxu0 %v4911_v63  ;;  %v4969_v63 = vld [vmem:[#allocation11 + $0x80] ss:$8 sps:$4 sm:$0xff]  }
 0xcc8   : > { %3144 = vmatpush1.bf16.msra.mxu0 %v4909_v2  ;;  %v4977_v2 = vld [vmem:[#allocation11 + $0x94] ss:$8 sps:$4 sm:$0xff]  }
 0xcc9   : > { %3145 = vmatprep.subr.bf16.mxu0 %v4917_v4  ;;  %v4975_v4 = vld [vmem:[#allocation11 + $0x90] ss:$8 sps:$4 sm:$0xff]  }
 0xccc   : > { %3146 = vmatpush1.bf16.msra.mxu0 %v4915_v8  ;;  %v4983_v8 = vld [vmem:[#allocation11 + $0xa4] ss:$8 sps:$4 sm:$0xff]  }
 0xccd   : > { %3597 = vmatprep.subr.bf16.mxu0 %v4923_v10  ;;  %v4981_v10 = vld [vmem:[#allocation11 + $0xa0] ss:$8 sps:$4 sm:$0xff]  }
 0xd4e   : > { %v2681_v12 = vpop.xlane.xlu1 %2680 }
 0xd4f   : > { %v2682_v13 = vmul.f32 0.00390625, %v2681_v12  ;;  %v4989_v12 = vld [vmem:[#allocation11 + $0xb4] ss:$8 sps:$4 sm:$0xff]  }
 0xd51   : > { %v2683_v57 = vadd.f32 1e-05, %v2682_v13  ;;  %v4992_v13 = vld [vmem:[#allocation11 + $0x1b4] ss:$8 sps:$4 sm:$0xff]  }
 0xd53   : > { %5035 = vrsqrt.f32 %v2683_v57  ;;  %v4987_v57 = vld [vmem:[#allocation11 + $0xb0] ss:$8 sps:$4 sm:$0xff]  }
 0xd5d   : > { %v5036_v17 = vpop.eup %5035 }
 0xd5e   : > { %v2685_v33 = vmul.f32 %v5036_v17, %v6177_v38  ;;  %v2686_v18 = vmul.f32 %v5036_v17, %v6180_v39  ;;  %v4944_v38 = vld [vmem:[#allocation11 + $0x134] ss:$8 sps:$4 sm:$0xff]   ;;  %v4939_v39 = vld [vmem:[#allocation11 + $0x30] ss:$8 sps:$4 sm:$0xff]   ;;  %v4996_v17 = vld [vmem:[#allocation11 + $0x1c0] ss:$8 sps:$4 sm:$0xff]  }
 0xd60   : > { %v2696_v23 = vmul.f32 %v2694_v15, %v2686_v18  ;;  %v2695_v24 = vmul.f32 %v2690_v16, %v2685_v33  ;;  %v4998_v15 = vld [vmem:[#allocation11 + $0x1c4] ss:$8 sps:$4 sm:$0xff]   ;;  %v4993_v16 = vld [vmem:[#allocation11 + $0xc0] ss:$8 sps:$4 sm:$0xff]   ;;  %v5001_v33 = vld [vmem:[#allocation11 + $0xd4] ss:$8 sps:$4 sm:$0xff]  }
 0xd61   : > { %v5004_v18 = vld [vmem:[#allocation11 + $0x1d4] ss:$8 sps:$4 sm:$0xff]  }
 0xd62   : > { %v6266_v25 = vadd.f32 %v2704_v19, %v2696_v23  ;;  %v6268_v26 = vadd.f32 %v2700_v20, %v2695_v24  ;;  %v4999_v19 = vld [vmem:[#allocation11 + $0xd0] ss:$8 sps:$4 sm:$0xff]   ;;  %v5007_v23 = vld [vmem:[#allocation11 + $0xe4] ss:$8 sps:$4 sm:$0xff]  }
 0xd63   : > { %v5002_v20 = vld [vmem:[#allocation11 + $0x1d0] ss:$8 sps:$4 sm:$0xff]   ;;  %v5010_v24 = vld [vmem:[#allocation11 + $0x1e4] ss:$8 sps:$4 sm:$0xff]  }
 0xd64   : > { %v2708_v46 = vpack.c.bf16 %v6266_v25, %v6266_v25  ;;  %v2707_v27 = vpack.c.bf16 %v6268_v26, %v6268_v26 }
 0xd66   : > { %3147 = vmatprep.mubr.bf16.mxu0 %v2708_v46  ;;  %3188 = vmatprep.mubr.bf16.mxu1 %v2708_v46  ;;  %v5005_v46 = vld [vmem:[#allocation11 + $0xe0] ss:$8 sps:$4 sm:$0xff]  }
 0xd67   : > { %3148 = vmatmul.mubr.bf16.vlgmr.msra.gmra.mrb[24].mxu0 %v2707_v27  ;;  %3189 = vmatmul.mubr.bf16.vlgmr.msra.gmra.mrb[32].mxu1 %v2707_v27  ;;  %v5008_v27 = vld [vmem:[#allocation11 + $0x1e0] ss:$8 sps:$4 sm:$0xff]  }
 0xd68   : > { %3598 = vmatpush1.bf16.msra.mxu0 %v4921_v28  ;;  %3639 = vmatpush1.bf16.msra.mxu1 %v4924_v37  ;;  %v5013_v28 = vld [vmem:[#allocation11 + $0xf4] ss:$8 sps:$4 sm:$0xff]  }
 0xd69   : > { %3599 = vmatprep.subr.bf16.mxu0 %v4929_v29  ;;  %3640 = vmatprep.subr.bf16.mxu1 %v4932_v31  ;;  %v5016_v37 = vld [vmem:[#allocation11 + $0x1f4] ss:$8 sps:$4 sm:$0xff]   ;;  %v5011_v29 = vld [vmem:[#allocation11 + $0xf0] ss:$8 sps:$4 sm:$0xff]  }
 0xd6a   : > { %v5014_v31 = vld [vmem:[#allocation11 + $0x1f0] ss:$8 sps:$4 sm:$0xff]  }
 0xd6c   : > { %3600 = vmatpush1.bf16.msra.mxu0 %v4927_v41  ;;  %3641 = vmatpush1.bf16.msra.mxu1 %v4930_v43  ;;  %v2773_v41 = vld [vmem:[%s6434_s10] sm:$0xf]  ;;  %s5244_s10 = sshll.u32 %s5394_s8, 4  ;;  %s5245_s10 = int_to_ptr.vmem [resolvable:$false] %s5244_s10 }
 0xd6d   : > { %3601 = vmatprep.subr.bf16.mxu0 %v4935_v32  ;;  %3642 = vmatprep.subr.bf16.mxu1 %v4938_v34  ;;  %v2778_v43 = vrot.slane %v2773_v41, %v5873_v49  ;;  %v2786_v32 = vrot.slane %v2773_v41, %v5983_v30  ;;  %v2782_v34 = vrot.slane %v2773_v41, %v5941_v5  ;;  %s5246_s28 = scalar_lea.vmem %s5245_s10, 512  ;;  %p5247_p1 = scmp.lt.s32.totalorder %s6297_s23, %s5245_s10 }
 0xd6e   : > { %p5248_p0 = scmp.lt.s32.totalorder %s5246_s28, %s5240_s20 }
 0xd70   : > { %3602 = vmatpush1.bf16.msra.mxu0 %v4933_v0  ;;  %3643 = vmatpush1.bf16.msra.mxu1 %v4936_v35  ;;  %v2790_v0 = vrot.slane %v2773_v41, %v6038_v40  ;;  %p5249_p7 = por %p5248_p0, %p5247_p1 }
 0xd71   : > { %3603 = vmatprep.subr.bf16.mxu0 %v4941_v36  ;;  %3644 = vmatprep.subr.bf16.mxu1 %v4944_v38 }
 0xd72   : > { %p5250_p2 = pnand %p5249_p7, %p5243_p12 }
 0xd74   : > { %3604 = vmatpush1.bf16.msra.mxu0 %v4939_v39  ;;  %3645 = vmatpush1.bf16.msra.mxu1 %v4942_v42 }
 0xd75   : > { %3605 = vmatprep.subr.bf16.mxu0 %v4947_v44  ;;  %3646 = vmatprep.subr.bf16.mxu1 %v4950_v45 }
 0xd78   : > { %3606 = vmatpush1.bf16.msra.mxu0 %v4945_v50  ;;  %3647 = vmatpush1.bf16.msra.mxu1 %v4948_v47 }
 0xd79   : > { %3607 = vmatprep.subr.bf16.mxu0 %v4953_v52  ;;  %3648 = vmatprep.subr.bf16.mxu1 %v4956_v48 }
 0xd7c   : > { %3608 = vmatpush1.bf16.msra.mxu0 %v4951_v51  ;;  %3649 = vmatpush1.bf16.msra.mxu1 %v4954_v53 }
 0xd7d   : > { %3609 = vmatprep.subr.bf16.mxu0 %v4959_v54  ;;  %3650 = vmatprep.subr.bf16.mxu1 %v4962_v55 }
 0xd80   : > { %3610 = vmatpush1.bf16.msra.mxu0 %v4957_v56  ;;  %3651 = vmatpush1.bf16.msra.mxu1 %v4960_v58 }
 0xd81   : > { %3611 = vmatprep.subr.bf16.mxu0 %v4965_v59  ;;  %3652 = vmatprep.subr.bf16.mxu1 %v4968_v60 }
 0xd84   : > { %3612 = vmatpush1.bf16.msra.mxu0 %v4963_v22  ;;  %3653 = vmatpush1.bf16.msra.mxu1 %v4966_v21  ;;  %v657_v22 = vld [vmem:[#allocation13 + $0x10] sm:$0x7]  ;;  %v658_v21 = vld [vmem:[#allocation13 + $0x18] sm:$0x7] }
 0xd85   : > { %3613 = vmatprep.subr.bf16.mxu0 %v4971_v61  ;;  %3654 = vmatprep.subr.bf16.mxu1 %v4974_v62  ;;  %v3272_v61 = vrot.slane %v657_v22, %v5983_v30  ;;  %v3276_v62 = vrot.slane %v658_v21, %v5983_v30 }
 0xd88   : > { %3614 = vmatpush1.bf16.msra.mxu0 %v4969_v63  ;;  %3655 = vmatpush1.bf16.msra.mxu1 %v4972_v1 }
 0xd89   : > { %3615 = vmatprep.subr.bf16.mxu0 %v4977_v2  ;;  %3656 = vmatprep.subr.bf16.mxu1 %v4980_v3 }
 0xd8c   : > { %3616 = vmatpush1.bf16.msra.mxu0 %v4975_v4  ;;  %3657 = vmatpush1.bf16.msra.mxu1 %v4978_v7 }
 0xd8d   : > { %3617 = vmatprep.subr.bf16.mxu0 %v4983_v8  ;;  %3658 = vmatprep.subr.bf16.mxu1 %v4986_v9 }
 0xd90   : > { %3618 = vmatpush1.bf16.msra.mxu0 %v4981_v10  ;;  %3659 = vmatpush1.bf16.msra.mxu1 %v4984_v11 }
 0xd91   : > { %3619 = vmatprep.subr.bf16.mxu0 %v4989_v12  ;;  %3660 = vmatprep.subr.bf16.mxu1 %v4992_v13 }
 0xd94   : > { %3620 = vmatpush1.bf16.msra.mxu0 %v4987_v57  ;;  %3661 = vmatpush1.bf16.msra.mxu1 %v4990_v6 }
 0xd95   : > { %3621 = vmatprep.subr.bf16.mxu0 %v4995_v14  ;;  %3662 = vmatprep.subr.bf16.mxu1 %v4998_v15 }
 0xd98   : > { %3622 = vmatpush1.bf16.msra.mxu0 %v4993_v16  ;;  %3663 = vmatpush1.bf16.msra.mxu1 %v4996_v17 }
 0xd99   : > { %3623 = vmatprep.subr.bf16.mxu0 %v5001_v33  ;;  %3664 = vmatprep.subr.bf16.mxu1 %v5004_v18 }
 0xd9c   : > { %3624 = vmatpush1.bf16.msra.mxu0 %v4999_v19  ;;  %3665 = vmatpush1.bf16.msra.mxu1 %v5002_v20 }
 0xd9d   : > { %3625 = vmatprep.subr.bf16.mxu0 %v5007_v23  ;;  %3666 = vmatprep.subr.bf16.mxu1 %v5010_v24 }
 0xda0   : > { %3626 = vmatpush1.bf16.msra.mxu0 %v5005_v46  ;;  %3667 = vmatpush1.bf16.msra.mxu1 %v5008_v27  ;;  %v3710_v27 = vrot.slane %v657_v22, %v5941_v5 }
 0xda1   : > { %3627 = vmatprep.subr.bf16.mxu0 %v5013_v28  ;;  %3668 = vmatprep.subr.bf16.mxu1 %v5016_v37  ;;  %v3714_v28 = vrot.slane %v658_v21, %v5941_v5 }
 0xda4   : > { %3628 = vmatpush1.bf16.msra.mxu0 %v5011_v29  ;;  %3669 = vmatpush1.bf16.msra.mxu1 %v5014_v31 }
 0xe3a   : > { %v3149_v35 = vpop.f32.mrb[24].mxu0  ;;  %v3190_v36 = vpop.f32.mrb[32].mxu1 }
 0xe3b   : > { %v3150_v38 = vadd.f32 %v3149_v35, %v2778_v43  ;;  %v3191_v39 = vadd.f32 %v3190_v36, %v2786_v32  ;;  %v3151_v42 = vpop.f32.mrb[25].mxu0  ;;  %v3192_v44 = vpop.f32.mrb[33].mxu1 }
 0xe3c   : > { %v3152_v45 = vadd.f32 %v3151_v42, %v2782_v34  ;;  %v3193_v50 = vadd.f32 %v3192_v44, %v2790_v0  ;;  %v3153_v47 = vpop.f32.mrb[26].mxu0  ;;  %v3194_v52 = vpop.f32.mrb[34].mxu1 }
 0xe3d   : > { %v3197_v48 = vmax.f32 %v3150_v38, 0.0  ;;  %v3199_v51 = vmax.f32 %v3191_v39, 0.0  ;;  %v3154_v53 = vpop.f32.mrb[27].mxu0  ;;  %v3195_v54 = vpop.f32.mrb[35].mxu1 }
 0xe3e   : > { %v3198_v55 = vmax.f32 %v3152_v45, 0.0  ;;  %v3200_v56 = vmax.f32 %v3193_v50, 0.0 }
 0xe3f   : > { %v3201_v60 = vpack.c.bf16 %v3197_v48, %v3197_v48  ;;  %v3203_v40 = vpack.c.bf16 %v3199_v51, %v3199_v51 }
 0xe40   : > { %v3202_v58 = vpack.c.bf16 %v3198_v55, %v3198_v55  ;;  %v3204_v59 = vpack.c.bf16 %v3200_v56, %v3200_v56 }
 0xe42   : > { %3629 = vmatprep.mubr.bf16.mxu0 %v3202_v58  ;;  %3670 = vmatprep.mubr.bf16.mxu1 %v3204_v59 }
 0xe43   : > { %3630 = vmatmul.mubr.bf16.vlgmr.msra.gmra.mrb[28].mxu0 %v3201_v60  ;;  %3671 = vmatmul.mubr.bf16.vlgmr.msra.gmra.mrb[36].mxu1 %v3203_v40 }
 0xf16   : > { %v3631_v63 = vpop.f32.mrb[28].mxu0  ;;  %v3672_v1 = vpop.f32.mrb[36].mxu1 }
 0xf17   : > { %v3632_v2 = vadd.f32 %v3631_v63, %v3272_v61  ;;  %v3633_v3 = vpop.f32.mrb[29].mxu0  ;;  %v3674_v4 = vpop.f32.mrb[37].mxu1 }
 0xf18   : > { %v3634_v7 = vadd.f32 %v3633_v3, %v3276_v62  ;;  %v3635_v8 = vpop.f32.mrb[30].mxu0  ;;  %v3676_v9 = vpop.f32.mrb[38].mxu1 }
 0xf19   : > { %v3673_v10 = vadd.f32 %v3672_v1, %v3632_v2  ;;  %v3636_v11 = vpop.f32.mrb[31].mxu0  ;;  %v3677_v12 = vpop.f32.mrb[39].mxu1 }
 0xf1a   : > { %v3675_v13 = vadd.f32 %v3674_v4, %v3634_v7 }
 0xf1b   : > { %v3679_v57 = vadd.f32 %v3673_v10, %v6268_v26  ;;  %v3704_v26 = vrot.slane %v658_v21, %v5873_v49 }
 0xf1c   : > { %v3680_v6 = vadd.f32 %v3675_v13, %v6266_v25  ;;  %v3700_v25 = vrot.slane %v657_v22, %v5873_v49 }
 0xf1e   : > { %v3681_v14 = vadd.f32 %v3680_v6, %v3679_v57 }
 0xf20   : > { %3682 = vadd.xlane.f32.xlu0 %v3681_v14 }
 0xfad   : > { %v3683_v30 = vpop.xlane.xlu0 %3682 }
 0xfae   : > { %v3684_v15 = vmul.f32 0.00390625, %v3683_v30 }
 0xfb0   : > { %v3685_v16 = vsub.f32 %v3679_v57, %v3684_v15  ;;  %v3686_v17 = vsub.f32 %v3680_v6, %v3684_v15 }
 0xfb2   : > { %v3687_v33 = vmul.f32 %v3685_v16, %v3685_v16  ;;  %v3688_v18 = vmul.f32 %v3686_v17, %v3686_v17 }
 0xfb4   : > { %v3689_v19 = vadd.f32 %v3688_v18, %v3687_v33 }
 0xfb6   : > { %3690 = vadd.xlane.f32.xlu1 %v3689_v19 }
0x1043   : > { %v3691_v20 = vpop.xlane.xlu1 %3690 }
0x1044   : > { %v3692_v23 = vmul.f32 0.00390625, %v3691_v20 }
0x1046   : > { %v3693_v24 = vadd.f32 1e-05, %v3692_v23 }
0x1048   : > { %5037 = vrsqrt.f32 %v3693_v24 }
0x1052   : > { %v5038_v46 = vpop.eup %5037 }
0x1053   : > { %v3695_v37 = vmul.f32 %v5038_v46, %v3685_v16  ;;  %v3696_v29 = vmul.f32 %v5038_v46, %v3686_v17 }
0x1055   : > { %v3705_v31 = vmul.f32 %v3700_v25, %v3695_v37  ;;  %v3706_v41 = vmul.f32 %v3704_v26, %v3696_v29 }
0x1057   : > { %v3715_v43 = vadd.f32 %v3710_v27, %v3705_v31  ;;  %v3716_v32 = vadd.f32 %v3714_v28, %v3706_v41 }
0x1059   : > { %3717 = vst [vmem:[%s629_s0] sm:$0xff] %v3715_v43  ;;  %3718 = vst [vmem:[%s629_s0 + $0x8] sm:$0xff] %v3716_v32 }
0x105a   : > { %5253 = shalt.err (!%p5250_p2)
}
0x105b   : > { %s5254_s2 = scalar_lea.hbm %s6295_s7, 256  ;;  %s5258_s5 = scalar_lea.hbm %s6435_s13, 1024 }
0x105c   : > { %p5255_p4 = scmp.ne.s32.totalorder %s6295_s7, %s5254_s2  ;;  %p5259_p8 = scmp.lt.u32.totalorder %s6295_s7, %s6435_s13 }
0x105d   : > { %p5260_p5 = scmp.lt.u32.totalorder %s5258_s5, %s5254_s2  ;;  %p5262_p6 = scmp.lt.u32.totalorder %s5254_s2, %s6295_s7 }
0x105e   : > { %p5256_p10 = pnand %p5255_p4, %p6436_p9 }
0x105f   : > { %p5261_p13 = por %p5260_p5, %p5259_p8 }
0x1060   : > { %p5257_p3 = pneg %p5256_p10 }
0x1061   : > { %p5263_p11 = por %p5262_p6, %p5261_p13 }
0x1063   : > { %p5264_p12 = pnand %p5263_p11, %p5257_p3 }
0x1065   : > { %5267 = shalt.err (!%p5264_p12)
}
0x1066   : > { %4449 = dma.vmem_to_hbm [thread:$0]  (%p6436_p9), %s6297_s23, 256, %s6295_s7, %s3720_s9  }
0x1067 PF: > { %s6437_s6 = sld [smem:[#allocation20_spill]]  ;;  %p4491_p1 = scmp.ge.s32.totalorder %s5374_s18, 2 }
0x1068   : > { %p6438_p0 = scmp.ne.s32.totalorder %s6419_s14, 0 }
0x106a   : > { %p4475_p7 = pnand %p4491_p1, %p6438_p0 }
0x106d   : > { %s3748_s24 = sand.u32 1, %s6437_s6  }
0x106e   : > { %s3749_s20 = scalar_lea.sflag [#allocation4], %s3748_s24 }
0x106f   : > { %5329 = dma.done.wait (!%p4475_p7), %s3749_s20, 256  }
0x1070   : > { %5331 = vsyncadd (!%p4475_p7), %s3749_s20, 4294967040  ;;  %s32_s18 = sadd.s32 1, %s5374_s18   ;;  %s6439_s25 = smov %s5338_s26 }
0x1071   : > { %p29_p2 = scmp.ge.s32.totalorder %s32_s18, 6   ;;  %s6440_s26 = smov %s5342_s27 }
0x1072   : > { %s6441_s27 = smov %s5743_s15  ;;  %s6442_s28 = smov %s5350_s29 }
0x1073   : > { %s6443_s29 = smov %s5354_s30  ;;  %s6444_s30 = smov %s5740_s1 }
0x1074   : > { %s6445_s14 = smov %s5366_s16  ;;  %s6446_s15 = smov %s5370_s17 }
0x1075   : > { %s6447_s16 = smov %s6450_s22  ;;  %s6448_s17 = smov %s6454_s19 }
0x1076   :  { %31 = sbr.rel (!%p29_p2) target bundleno = 27 (0x1b), region = 155 }
0x107d   :  { %3754 = vsyncpa [#allocation3], 1 }
0x107e   :  { %3756 = vsyncpa [#allocation3 + $0x1], 1 }
0x107f   :  { %3757 = vsyncpa [#allocation6], 1 }
0x1080   :  { %3758 = vsyncpa [#allocation9], 1 }
0x1081   :  { %3759 = vsyncpa [#allocation12], 1 }
0x1082   :  { %3760 = vsyncpa [#allocation4], 1 }
0x1083   :  { %3762 = vsyncpa [#allocation4 + $0x1], 1 }

</bundles_post_ra>
